<compile_context>
chip_gen: v7x
topology: tpu7x:2x2x1
jax: 0.10.0
libtpu: 0.0.40
codegen_flags: <defaults>
</compile_context>

<pallas_src>
import functools

import jax
import jax.numpy as jnp
from jax.experimental import pallas as pl
from jax.experimental.pallas import tpu as pltpu

_LANE = 128          # lane width: pad feature dims to multiples of this
_SUBLANE = 16        # bf16-safe row quantum
_MAX_TM = 512        # biggest row tile we allow (VMEM-safe on all gens here)
_VMEM_LIMIT_BYTES = 48 * 1024 * 1024   # < 64 MiB physical VMEM on v7x


# --------------------------------------------------------------------------
# helpers
# --------------------------------------------------------------------------
def _round_up(x, m):
    return (x + m - 1) // m * m


def _pad2d(a, rows, cols):
    r, c = a.shape
    return jnp.pad(a, ((0, rows - r), (0, cols - c)))


def _pick_tm(n_rows, max_tm=_MAX_TM):
    """Largest row tile (multiple of 16, divides n_rows, <= max_tm) that keeps
    at least two grid steps when possible (v7x has 2 TensorCores; extra grid
    steps cost ~0.35 us each on v5e/v6e, negligible)."""
    best_any, best_multi = None, None
    for tm in range(_SUBLANE, min(n_rows, max_tm) + 1, _SUBLANE):
        if n_rows % tm == 0:
            best_any = tm
            if n_rows // tm >= 2:
                best_multi = tm
    if best_multi is not None:
        return best_multi
    if best_any is not None:
        return best_any
    return n_rows


def _compiler_params():
    return pltpu.CompilerParams(
        dimension_semantics=("parallel",),
        vmem_limit_bytes=_VMEM_LIMIT_BYTES,
    )


# --------------------------------------------------------------------------
# kernels
# --------------------------------------------------------------------------
def _gcn_layer_kernel(adj_ref, x_ref, w_ref, b_ref, o_ref, *, apply_relu):
    # adj_ref: (TM, N) bf16   x_ref: (N, Fin) bf16   w_ref: (Fin, Fout) bf16
    # b_ref:   (1, Fout) f32  o_ref: (TM, Fout)
    # (adj_tile @ x) @ W + b  -- bf16 MXU inputs, f32 accumulation.
    tmp = jnp.dot(adj_ref[...], x_ref[...], preferred_element_type=jnp.float32)
    out = jnp.dot(tmp.astype(jnp.bfloat16), w_ref[...],
                  preferred_element_type=jnp.float32)
    out = out + b_ref[...]
    if apply_relu:
        out = jnp.maximum(out, 0.0)
    o_ref[...] = out.astype(o_ref.dtype)


def _gcn_pair_kernel(adj_ref, x_ref, w_mu_ref, b_mu_ref, w_lv_ref, b_lv_ref,
                     mu_ref, lv_ref):
    # gc2 and gc3 share the expensive adj @ hidden1 contraction.
    tmp = jnp.dot(adj_ref[...], x_ref[...],
                  preferred_element_type=jnp.float32).astype(jnp.bfloat16)
    mu = jnp.dot(tmp, w_mu_ref[...], preferred_element_type=jnp.float32)
    lv = jnp.dot(tmp, w_lv_ref[...], preferred_element_type=jnp.float32)
    mu_ref[...] = (mu + b_mu_ref[...]).astype(mu_ref.dtype)
    lv_ref[...] = (lv + b_lv_ref[...]).astype(lv_ref.dtype)


def _inner_product_kernel(z_row_ref, z_all_ref, o_ref):
    # z_row: (TM, D) bf16, z_all: (N, D) bf16 -> o: (TM, N) = z_row @ z_all.T
    o_ref[...] = jax.lax.dot_general(
        z_row_ref[...], z_all_ref[...],
        dimension_numbers=(((1,), (1,)), ((), ())),
        preferred_element_type=jnp.float32,
    ).astype(o_ref.dtype)


# --------------------------------------------------------------------------
# pallas_call wrappers
# --------------------------------------------------------------------------
# NOTE: the constant-index (resident) weight/bias/feature blocks could be
# single-buffered with pipeline_mode=pl.Buffered(1); left at the default here
# since they are tiny at these shapes and Pallas skips re-copies for blocks
# whose index does not change across the grid.
def _gcn_layer(adj, x, w, b, *, apply_relu, out_dtype, tm):
    n_rows, n_nodes = adj.shape
    f_in, f_out = w.shape
    grid = (n_rows // tm,)
    flops = 2 * n_rows * n_nodes * f_in + 2 * n_rows * f_in * f_out
    bytes_accessed = (adj.size * 2 + x.size * 2 + w.size * 2 + b.size * 4
                      + n_rows * f_out * jnp.dtype(out_dtype).itemsize)
    return pl.pallas_call(
        functools.partial(_gcn_layer_kernel, apply_relu=apply_relu),
        out_shape=jax.ShapeDtypeStruct((n_rows, f_out), out_dtype),
        grid=grid,
        in_specs=[
            pl.BlockSpec((tm, n_nodes), lambda i: (i, 0)),    # adj row tile
            pl.BlockSpec((n_nodes, f_in), lambda i: (0, 0)),  # features (resident)
            pl.BlockSpec((f_in, f_out), lambda i: (0, 0)),    # W (resident)
            pl.BlockSpec((1, f_out), lambda i: (0, 0)),       # b (resident)
        ],
        out_specs=pl.BlockSpec((tm, f_out), lambda i: (i, 0)),
        compiler_params=_compiler_params(),
        cost_estimate=pl.CostEstimate(flops=flops, transcendentals=0,
                                      bytes_accessed=bytes_accessed),
    )(adj, x, w, b)


def _gcn_pair(adj, x, w_mu, b_mu, w_lv, b_lv, *, tm):
    n_rows, n_nodes = adj.shape
    f_in, f_out = w_mu.shape
    grid = (n_rows // tm,)
    flops = 2 * n_rows * n_nodes * f_in + 4 * n_rows * f_in * f_out
    bytes_accessed = (adj.size * 2 + x.size * 2 + 2 * w_mu.size * 2
                      + 2 * b_mu.size * 4 + 2 * n_rows * f_out * 4)
    out_sds = jax.ShapeDtypeStruct((n_rows, f_out), jnp.float32)
    return pl.pallas_call(
        _gcn_pair_kernel,
        out_shape=(out_sds, out_sds),
        grid=grid,
        in_specs=[
            pl.BlockSpec((tm, n_nodes), lambda i: (i, 0)),    # adj row tile
            pl.BlockSpec((n_nodes, f_in), lambda i: (0, 0)),  # hidden1 (resident)
            pl.BlockSpec((f_in, f_out), lambda i: (0, 0)),    # W_mu
            pl.BlockSpec((1, f_out), lambda i: (0, 0)),       # b_mu
            pl.BlockSpec((f_in, f_out), lambda i: (0, 0)),    # W_logvar
            pl.BlockSpec((1, f_out), lambda i: (0, 0)),       # b_logvar
        ],
        out_specs=(pl.BlockSpec((tm, f_out), lambda i: (i, 0)),
                   pl.BlockSpec((tm, f_out), lambda i: (i, 0))),
        compiler_params=_compiler_params(),
        cost_estimate=pl.CostEstimate(flops=flops, transcendentals=0,
                                      bytes_accessed=bytes_accessed),
    )(adj, x, w_mu, b_mu, w_lv, b_lv)


def _inner_product(z, *, tm):
    n_rows, d = z.shape
    grid = (n_rows // tm,)
    flops = 2 * n_rows * n_rows * d
    bytes_accessed = 2 * z.size * 2 + n_rows * n_rows * 4
    return pl.pallas_call(
        _inner_product_kernel,
        out_shape=jax.ShapeDtypeStruct((n_rows, n_rows), jnp.float32),
        grid=grid,
        in_specs=[
            pl.BlockSpec((tm, d), lambda i: (i, 0)),       # z row tile
            pl.BlockSpec((n_rows, d), lambda i: (0, 0)),   # z (resident)
        ],
        out_specs=pl.BlockSpec((tm, n_rows), lambda i: (i, 0)),
        compiler_params=_compiler_params(),
        cost_estimate=pl.CostEstimate(flops=flops, transcendentals=0,
                                      bytes_accessed=bytes_accessed),
    )(z, z)


# --------------------------------------------------------------------------
# full GCNModelVAE forward (eval mode)
# --------------------------------------------------------------------------
@functools.partial(jax.jit, static_argnames=("reconstruct_type",))
def gcn_model_vae_forward(x, adj, params, reconstruct_type="X"):
    """Returns (pred, mu, logvar) like GCNModelVAE.forward in eval mode."""
    n, f_in = x.shape
    h1 = params["w_gc1"].shape[1]
    h2 = params["w_gc2"].shape[1]

    # Pad node dim to the sublane quantum and feature dims to full 128-lane
    # width (zero padding is exact; keeps every output lane-dense).
    n_p = _round_up(n, _SUBLANE)
    f_in_p = _round_up(f_in, _LANE)
    h1_p = _round_up(h1, _LANE)
    h2_p = _round_up(h2, _LANE)

    # bf16 MXU inputs; the cast happens here so the kernel DMAs also move bf16.
    adj_b = _pad2d(adj, n_p, n_p).astype(jnp.bfloat16)
    x_b = _pad2d(x, n_p, f_in_p).astype(jnp.bfloat16)

    w_gc1 = _pad2d(params["w_gc1"], f_in_p, h1_p).astype(jnp.bfloat16)
    b_gc1 = _pad2d(params["b_gc1"], 1, h1_p)
    w_gc2 = _pad2d(params["w_gc2"], h1_p, h2_p).astype(jnp.bfloat16)
    b_gc2 = _pad2d(params["b_gc2"], 1, h2_p)
    w_gc3 = _pad2d(params["w_gc3"], h1_p, h2_p).astype(jnp.bfloat16)
    b_gc3 = _pad2d(params["b_gc3"], 1, h2_p)

    tm = _pick_tm(n_p)

    # ---- encoder ----
    hidden1 = _gcn_layer(adj_b, x_b, w_gc1, b_gc1, apply_relu=True,
                         out_dtype=jnp.bfloat16, tm=tm)
    # dropout (eval) = identity
    mu, logvar = _gcn_pair(adj_b, hidden1, w_gc2, b_gc2, w_gc3, b_gc3, tm=tm)
    z = mu  # reparameterize (eval) returns mu

    # ---- decoder ----
    if reconstruct_type == "X":
        w_dc1 = _pad2d(params["w_dc1"], h2_p, h1_p).astype(jnp.bfloat16)
        b_dc1 = _pad2d(params["b_dc1"], 1, h1_p)
        w_dc2 = _pad2d(params["w_dc2"], h1_p, f_in_p).astype(jnp.bfloat16)
        b_dc2 = _pad2d(params["b_dc2"], 1, f_in_p)
        z_b = z.astype(jnp.bfloat16)
        h = _gcn_layer(adj_b, z_b, w_dc1, b_dc1, apply_relu=True,
                       out_dtype=jnp.bfloat16, tm=tm)
        pred_p = _gcn_layer(adj_b, h, w_dc2, b_dc2, apply_relu=False,
                            out_dtype=jnp.float32, tm=tm)
        pred = pred_p[:n, :f_in]
    elif reconstruct_type == "A":
        z_b = z.astype(jnp.bfloat16)
        pred_p = _inner_product(z_b, tm=tm)   # act = lambda x: x (identity)
        pred = pred_p[:n, :n]
    else:
        raise ValueError("Specify the Reconstruction Type as A or X")

    return pred, mu[:n, :h2], logvar[:n, :h2]


# --------------------------------------------------------------------------
# params + pure-JAX reference (same bf16 strategy / association as the kernels)
# --------------------------------------------------------------------------
def init_params(key, input_feat_dim, hidden_dim1, hidden_dim2):
    """GraphConvolution weights stored as (in_features, out_features)."""
    def lin(k, fan_in, fan_out):
        kw, kb = jax.random.split(k)
        bound = 1.0 / (fan_in ** 0.5)
        w = jax.random.uniform(kw, (fan_in, fan_out), jnp.float32, -bound, bound)
        b = jax.random.uniform(kb, (1, fan_out), jnp.float32, -bound, bound)
        return w, b

    keys = jax.random.split(key, 5)
    w_gc1, b_gc1 = lin(keys[0], input_feat_dim, hidden_dim1)
    w_gc2, b_gc2 = lin(keys[1], hidden_dim1, hidden_dim2)
    w_gc3, b_gc3 = lin(keys[2], hidden_dim1, hidden_dim2)
    w_dc1, b_dc1 = lin(keys[3], hidden_dim2, hidden_dim1)
    w_dc2, b_dc2 = lin(keys[4], hidden_dim1, input_feat_dim)
    return dict(w_gc1=w_gc1, b_gc1=b_gc1, w_gc2=w_gc2, b_gc2=b_gc2,
                w_gc3=w_gc3, b_gc3=b_gc3, w_dc1=w_dc1, b_dc1=b_dc1,
                w_dc2=w_dc2, b_dc2=b_dc2)


def _reference_forward(x, adj, params, reconstruct_type):
    def mm(a, b):
        return jnp.dot(a.astype(jnp.bfloat16), b.astype(jnp.bfloat16),
                       preferred_element_type=jnp.float32)

    def gcn(a, h, w, b, relu):
        out = mm(mm(a, h), w) + b
        return jnp.maximum(out, 0.0) if relu else out

    h1 = gcn(adj, x, params["w_gc1"], params["b_gc1"], True)
    mu = gcn(adj, h1, params["w_gc2"], params["b_gc2"], False)
    logvar = gcn(adj, h1, params["w_gc3"], params["b_gc3"], False)
    z = mu
    if reconstruct_type == "X":
        h = gcn(adj, z, params["w_dc1"], params["b_dc1"], True)
        pred = gcn(adj, h, params["w_dc2"], params["b_dc2"], False)
    else:
        zb = z.astype(jnp.bfloat16)
        pred = jnp.dot(zb, zb.T, preferred_element_type=jnp.float32)
    return pred, mu, logvar


# --------------------------------------------------------------------------
if __name__ == "__main__":
    # Small shapes consistent with the module (citeseer: 3703/32/16, scaled down).
    N, input_feat_dim, hidden_dim1, hidden_dim2 = 256, 96, 32, 16
    dropout = 0.5  # identity in eval mode

    key = jax.random.PRNGKey(0)
    kx, ka, kp = jax.random.split(key, 3)
    x = jax.random.normal(kx, (N, input_feat_dim), jnp.float32)

    # Dense symmetrically-normalized adjacency with self loops (usual GCN prep).
    a = (jax.random.uniform(ka, (N, N)) < 0.03).astype(jnp.float32)
    a = jnp.maximum(a, a.T)
    a = jnp.maximum(a, jnp.eye(N, dtype=jnp.float32))
    d_inv_sqrt = 1.0 / jnp.sqrt(jnp.sum(a, axis=1))
    adj = a * d_inv_sqrt[:, None] * d_inv_sqrt[None, :]

    params = init_params(kp, input_feat_dim, hidden_dim1, hidden_dim2)

    for rtype in ("X", "A"):
        pred, mu, logvar = gcn_model_vae_forward(x, adj, params,
                                                 reconstruct_type=rtype)
        pred, mu, logvar = jax.block_until_ready((pred, mu, logvar))

        pred_r, mu_r, logvar_r = _reference_forward(x, adj, params, rtype)
        assert mu.shape == (N, hidden_dim2) and logvar.shape == (N, hidden_dim2)
        assert pred.shape == ((N, input_feat_dim) if rtype == "X" else (N, N))
        assert jnp.allclose(mu, mu_r, atol=2e-2, rtol=2e-2), "mu mismatch"
        assert jnp.allclose(logvar, logvar_r, atol=2e-2, rtol=2e-2), "logvar mismatch"
        assert jnp.allclose(pred, pred_r, atol=2e-2, rtol=2e-2), f"pred mismatch ({rtype})"

    print("KERNEL_OK")
</pallas_src>

<mosaic_0001>
module attributes {stable_mosaic.version = 11 : i64} {
  func.func @_gcn_layer_kernel(%arg0: i32, %arg1: memref<128x256xbf16, #tpu.memory_space<vmem>>, %arg2: memref<256x128xbf16, #tpu.memory_space<vmem>>, %arg3: memref<128x128xbf16, #tpu.memory_space<vmem>>, %arg4: memref<1x128xf32, #tpu.memory_space<vmem>>, %arg5: memref<128x128xbf16, #tpu.memory_space<vmem>>) attributes {dimension_semantics = [#tpu.dimension_semantics<parallel>], iteration_bounds = array<i64: 2>, scalar_prefetch = 0 : i64, scratch_operands = 0 : i64, tpu.core_type = #tpu.core_type<tc>, window_params = [{transform_indices = @transform_0, window_bounds = array<i64: 128, 256>}, {pipeline_mode = #tpu.pipeline_mode<synchronous>, transform_indices = @transform_1, window_bounds = array<i64: 256, 128>}, {pipeline_mode = #tpu.pipeline_mode<synchronous>, transform_indices = @transform_2, window_bounds = array<i64: 128, 128>}, {pipeline_mode = #tpu.pipeline_mode<synchronous>, transform_indices = @transform_3, window_bounds = array<i64: 1, 128>}, {transform_indices = @transform_4, window_bounds = array<i64: 128, 128>}]} {
    %c0 = arith.constant 0 : index
    %c0_0 = arith.constant 0 : index
    %0 = vector.load %arg1[%c0, %c0_0] : memref<128x256xbf16, #tpu.memory_space<vmem>>, vector<128x256xbf16>
    %c0_1 = arith.constant 0 : index
    %c0_2 = arith.constant 0 : index
    %1 = vector.load %arg2[%c0_1, %c0_2] : memref<256x128xbf16, #tpu.memory_space<vmem>>, vector<256x128xbf16>
    %cst = arith.constant dense<0.000000e+00> : vector<128x128xf32>
    %2 = tpu.matmul %0, %1, %cst {dimension_numbers = #tpu.dot_dimension_numbers<[1], [0], [0], [1], [0, 0, 1, 1], [], []>} : vector<128x256xbf16>, vector<256x128xbf16>, vector<128x128xf32> -> vector<128x128xf32>
    %3 = arith.truncf %2 : vector<128x128xf32> to vector<128x128xbf16>
    %c0_3 = arith.constant 0 : index
    %c0_4 = arith.constant 0 : index
    %4 = vector.load %arg3[%c0_3, %c0_4] : memref<128x128xbf16, #tpu.memory_space<vmem>>, vector<128x128xbf16>
    %cst_5 = arith.constant dense<0.000000e+00> : vector<128x128xf32>
    %5 = tpu.matmul %3, %4, %cst_5 {dimension_numbers = #tpu.dot_dimension_numbers<[1], [0], [0], [1], [0, 0, 1, 1], [], []>} : vector<128x128xbf16>, vector<128x128xbf16>, vector<128x128xf32> -> vector<128x128xf32>
    %c0_6 = arith.constant 0 : index
    %c0_7 = arith.constant 0 : index
    %6 = vector.load %arg4[%c0_6, %c0_7] : memref<1x128xf32, #tpu.memory_space<vmem>>, vector<1x128xf32>
    %7 = vector.broadcast %6 : vector<1x128xf32> to vector<128x128xf32>
    %8 = arith.addf %5, %7 : vector<128x128xf32>
    %cst_8 = arith.constant 0.000000e+00 : f32
    %9 = vector.broadcast %cst_8 : f32 to vector<128x128xf32>
    %10 = arith.maximumf %8, %9 : vector<128x128xf32>
    %11 = arith.truncf %10 : vector<128x128xf32> to vector<128x128xbf16>
    %c0_9 = arith.constant 0 : index
    %c0_10 = arith.constant 0 : index
    %12 = vector.load %arg5[%c0_9, %c0_10] : memref<128x128xbf16, #tpu.memory_space<vmem>>, vector<128x128xbf16>
    tpu.vector_store %arg5[%c0_9, %c0_10], %11 {strides = array<i32>} : memref<128x128xbf16, #tpu.memory_space<vmem>>, vector<128x128xbf16>,
    return
  }
  func.func @transform_0(%arg0: i32) -> (i32, i32) {
    %c0_i32 = arith.constant 0 : i32
    %c0_i32_0 = arith.constant 0 : i32
    return %arg0, %c0_i32 : i32, i32
  }
  func.func @transform_1(%arg0: i32) -> (i32, i32) {
    %c0_i32 = arith.constant 0 : i32
    %c0_i32_0 = arith.constant 0 : i32
    %c0_i32_1 = arith.constant 0 : i32
    return %c0_i32, %c0_i32_0 : i32, i32
  }
  func.func @transform_2(%arg0: i32) -> (i32, i32) {
    %c0_i32 = arith.constant 0 : i32
    %c0_i32_0 = arith.constant 0 : i32
    %c0_i32_1 = arith.constant 0 : i32
    return %c0_i32, %c0_i32_0 : i32, i32
  }
  func.func @transform_3(%arg0: i32) -> (i32, i32) {
    %c0_i32 = arith.constant 0 : i32
    %c0_i32_0 = arith.constant 0 : i32
    %c0_i32_1 = arith.constant 0 : i32
    return %c0_i32, %c0_i32_0 : i32, i32
  }
  func.func @transform_4(%arg0: i32) -> (i32, i32) {
    %c0_i32 = arith.constant 0 : i32
    %c0_i32_0 = arith.constant 0 : i32
    return %arg0, %c0_i32 : i32, i32
  }
}

module attributes {stable_mosaic.version = 11 : i64} {
  func.func @_gcn_pair_kernel(%arg0: i32, %arg1: memref<128x256xbf16, #tpu.memory_space<vmem>>, %arg2: memref<256x128xbf16, #tpu.memory_space<vmem>>, %arg3: memref<128x128xbf16, #tpu.memory_space<vmem>>, %arg4: memref<1x128xf32, #tpu.memory_space<vmem>>, %arg5: memref<128x128xbf16, #tpu.memory_space<vmem>>, %arg6: memref<1x128xf32, #tpu.memory_space<vmem>>, %arg7: memref<128x128xf32, #tpu.memory_space<vmem>>, %arg8: memref<128x128xf32, #tpu.memory_space<vmem>>) attributes {dimension_semantics = [#tpu.dimension_semantics<parallel>], iteration_bounds = array<i64: 2>, scalar_prefetch = 0 : i64, scratch_operands = 0 : i64, tpu.core_type = #tpu.core_type<tc>, window_params = [{transform_indices = @transform_0, window_bounds = array<i64: 128, 256>}, {pipeline_mode = #tpu.pipeline_mode<synchronous>, transform_indices = @transform_1, window_bounds = array<i64: 256, 128>}, {pipeline_mode = #tpu.pipeline_mode<synchronous>, transform_indices = @transform_2, window_bounds = array<i64: 128, 128>}, {pipeline_mode = #tpu.pipeline_mode<synchronous>, transform_indices = @transform_3, window_bounds = array<i64: 1, 128>}, {pipeline_mode = #tpu.pipeline_mode<synchronous>, transform_indices = @transform_4, window_bounds = array<i64: 128, 128>}, {pipeline_mode = #tpu.pipeline_mode<synchronous>, transform_indices = @transform_5, window_bounds = array<i64: 1, 128>}, {transform_indices = @transform_6, window_bounds = array<i64: 128, 128>}, {transform_indices = @transform_7, window_bounds = array<i64: 128, 128>}]} {
    %c0 = arith.constant 0 : index
    %c0_0 = arith.constant 0 : index
    %0 = vector.load %arg1[%c0, %c0_0] : memref<128x256xbf16, #tpu.memory_space<vmem>>, vector<128x256xbf16>
    %c0_1 = arith.constant 0 : index
    %c0_2 = arith.constant 0 : index
    %1 = vector.load %arg2[%c0_1, %c0_2] : memref<256x128xbf16, #tpu.memory_space<vmem>>, vector<256x128xbf16>
    %cst = arith.constant dense<0.000000e+00> : vector<128x128xf32>
    %2 = tpu.matmul %0, %1, %cst {dimension_numbers = #tpu.dot_dimension_numbers<[1], [0], [0], [1], [0, 0, 1, 1], [], []>} : vector<128x256xbf16>, vector<256x128xbf16>, vector<128x128xf32> -> vector<128x128xf32>
    %3 = arith.truncf %2 : vector<128x128xf32> to vector<128x128xbf16>
    %c0_3 = arith.constant 0 : index
    %c0_4 = arith.constant 0 : index
    %4 = vector.load %arg3[%c0_3, %c0_4] : memref<128x128xbf16, #tpu.memory_space<vmem>>, vector<128x128xbf16>
    %cst_5 = arith.constant dense<0.000000e+00> : vector<128x128xf32>
    %5 = tpu.matmul %3, %4, %cst_5 {dimension_numbers = #tpu.dot_dimension_numbers<[1], [0], [0], [1], [0, 0, 1, 1], [], []>} : vector<128x128xbf16>, vector<128x128xbf16>, vector<128x128xf32> -> vector<128x128xf32>
    %c0_6 = arith.constant 0 : index
    %c0_7 = arith.constant 0 : index
    %6 = vector.load %arg5[%c0_6, %c0_7] : memref<128x128xbf16, #tpu.memory_space<vmem>>, vector<128x128xbf16>
    %cst_8 = arith.constant dense<0.000000e+00> : vector<128x128xf32>
    %7 = tpu.matmul %3, %6, %cst_8 {dimension_numbers = #tpu.dot_dimension_numbers<[1], [0], [0], [1], [0, 0, 1, 1], [], []>} : vector<128x128xbf16>, vector<128x128xbf16>, vector<128x128xf32> -> vector<128x128xf32>
    %c0_9 = arith.constant 0 : index
    %c0_10 = arith.constant 0 : index
    %8 = vector.load %arg4[%c0_9, %c0_10] : memref<1x128xf32, #tpu.memory_space<vmem>>, vector<1x128xf32>
    %9 = vector.broadcast %8 : vector<1x128xf32> to vector<128x128xf32>
    %10 = arith.addf %5, %9 : vector<128x128xf32>
    %c0_11 = arith.constant 0 : index
    %c0_12 = arith.constant 0 : index
    %11 = vector.load %arg7[%c0_11, %c0_12] : memref<128x128xf32, #tpu.memory_space<vmem>>, vector<128x128xf32>
    tpu.vector_store %arg7[%c0_11, %c0_12], %10 {strides = array<i32>} : memref<128x128xf32, #tpu.memory_space<vmem>>, vector<128x128xf32>,
    %c0_13 = arith.constant 0 : index
    %c0_14 = arith.constant 0 : index
    %12 = vector.load %arg6[%c0_13, %c0_14] : memref<1x128xf32, #tpu.memory_space<vmem>>, vector<1x128xf32>
    %13 = vector.broadcast %12 : vector<1x128xf32> to vector<128x128xf32>
    %14 = arith.addf %7, %13 : vector<128x128xf32>
    %c0_15 = arith.constant 0 : index
    %c0_16 = arith.constant 0 : index
    %15 = vector.load %arg8[%c0_15, %c0_16] : memref<128x128xf32, #tpu.memory_space<vmem>>, vector<128x128xf32>
    tpu.vector_store %arg8[%c0_15, %c0_16], %14 {strides = array<i32>} : memref<128x128xf32, #tpu.memory_space<vmem>>, vector<128x128xf32>,
    return
  }
  func.func @transform_0(%arg0: i32) -> (i32, i32) {
    %c0_i32 = arith.constant 0 : i32
    %c0_i32_0 = arith.constant 0 : i32
    return %arg0, %c0_i32 : i32, i32
  }
  func.func @transform_1(%arg0: i32) -> (i32, i32) {
    %c0_i32 = arith.constant 0 : i32
    %c0_i32_0 = arith.constant 0 : i32
    %c0_i32_1 = arith.constant 0 : i32
    return %c0_i32, %c0_i32_0 : i32, i32
  }
  func.func @transform_2(%arg0: i32) -> (i32, i32) {
    %c0_i32 = arith.constant 0 : i32
    %c0_i32_0 = arith.constant 0 : i32
    %c0_i32_1 = arith.constant 0 : i32
    return %c0_i32, %c0_i32_0 : i32, i32
  }
  func.func @transform_3(%arg0: i32) -> (i32, i32) {
    %c0_i32 = arith.constant 0 : i32
    %c0_i32_0 = arith.constant 0 : i32
    %c0_i32_1 = arith.constant 0 : i32
    return %c0_i32, %c0_i32_0 : i32, i32
  }
  func.func @transform_4(%arg0: i32) -> (i32, i32) {
    %c0_i32 = arith.constant 0 : i32
    %c0_i32_0 = arith.constant 0 : i32
    %c0_i32_1 = arith.constant 0 : i32
    return %c0_i32, %c0_i32_0 : i32, i32
  }
  func.func @transform_5(%arg0: i32) -> (i32, i32) {
    %c0_i32 = arith.constant 0 : i32
    %c0_i32_0 = arith.constant 0 : i32
    %c0_i32_1 = arith.constant 0 : i32
    return %c0_i32, %c0_i32_0 : i32, i32
  }
  func.func @transform_6(%arg0: i32) -> (i32, i32) {
    %c0_i32 = arith.constant 0 : i32
    %c0_i32_0 = arith.constant 0 : i32
    return %arg0, %c0_i32 : i32, i32
  }
  func.func @transform_7(%arg0: i32) -> (i32, i32) {
    %c0_i32 = arith.constant 0 : i32
    %c0_i32_0 = arith.constant 0 : i32
    return %arg0, %c0_i32 : i32, i32
  }
}

module attributes {stable_mosaic.version = 11 : i64} {
  func.func @_gcn_layer_kernel(%arg0: i32, %arg1: memref<128x256xbf16, #tpu.memory_space<vmem>>, %arg2: memref<256x128xbf16, #tpu.memory_space<vmem>>, %arg3: memref<128x128xbf16, #tpu.memory_space<vmem>>, %arg4: memref<1x128xf32, #tpu.memory_space<vmem>>, %arg5: memref<128x128xf32, #tpu.memory_space<vmem>>) attributes {dimension_semantics = [#tpu.dimension_semantics<parallel>], iteration_bounds = array<i64: 2>, scalar_prefetch = 0 : i64, scratch_operands = 0 : i64, tpu.core_type = #tpu.core_type<tc>, window_params = [{transform_indices = @transform_0, window_bounds = array<i64: 128, 256>}, {pipeline_mode = #tpu.pipeline_mode<synchronous>, transform_indices = @transform_1, window_bounds = array<i64: 256, 128>}, {pipeline_mode = #tpu.pipeline_mode<synchronous>, transform_indices = @transform_2, window_bounds = array<i64: 128, 128>}, {pipeline_mode = #tpu.pipeline_mode<synchronous>, transform_indices = @transform_3, window_bounds = array<i64: 1, 128>}, {transform_indices = @transform_4, window_bounds = array<i64: 128, 128>}]} {
    %c0 = arith.constant 0 : index
    %c0_0 = arith.constant 0 : index
    %0 = vector.load %arg1[%c0, %c0_0] : memref<128x256xbf16, #tpu.memory_space<vmem>>, vector<128x256xbf16>
    %c0_1 = arith.constant 0 : index
    %c0_2 = arith.constant 0 : index
    %1 = vector.load %arg2[%c0_1, %c0_2] : memref<256x128xbf16, #tpu.memory_space<vmem>>, vector<256x128xbf16>
    %cst = arith.constant dense<0.000000e+00> : vector<128x128xf32>
    %2 = tpu.matmul %0, %1, %cst {dimension_numbers = #tpu.dot_dimension_numbers<[1], [0], [0], [1], [0, 0, 1, 1], [], []>} : vector<128x256xbf16>, vector<256x128xbf16>, vector<128x128xf32> -> vector<128x128xf32>
    %3 = arith.truncf %2 : vector<128x128xf32> to vector<128x128xbf16>
    %c0_3 = arith.constant 0 : index
    %c0_4 = arith.constant 0 : index
    %4 = vector.load %arg3[%c0_3, %c0_4] : memref<128x128xbf16, #tpu.memory_space<vmem>>, vector<128x128xbf16>
    %cst_5 = arith.constant dense<0.000000e+00> : vector<128x128xf32>
    %5 = tpu.matmul %3, %4, %cst_5 {dimension_numbers = #tpu.dot_dimension_numbers<[1], [0], [0], [1], [0, 0, 1, 1], [], []>} : vector<128x128xbf16>, vector<128x128xbf16>, vector<128x128xf32> -> vector<128x128xf32>
    %c0_6 = arith.constant 0 : index
    %c0_7 = arith.constant 0 : index
    %6 = vector.load %arg4[%c0_6, %c0_7] : memref<1x128xf32, #tpu.memory_space<vmem>>, vector<1x128xf32>
    %7 = vector.broadcast %6 : vector<1x128xf32> to vector<128x128xf32>
    %8 = arith.addf %5, %7 : vector<128x128xf32>
    %c0_8 = arith.constant 0 : index
    %c0_9 = arith.constant 0 : index
    %9 = vector.load %arg5[%c0_8, %c0_9] : memref<128x128xf32, #tpu.memory_space<vmem>>, vector<128x128xf32>
    tpu.vector_store %arg5[%c0_8, %c0_9], %8 {strides = array<i32>} : memref<128x128xf32, #tpu.memory_space<vmem>>, vector<128x128xf32>,
    return
  }
  func.func @transform_0(%arg0: i32) -> (i32, i32) {
    %c0_i32 = arith.constant 0 : i32
    %c0_i32_0 = arith.constant 0 : i32
    return %arg0, %c0_i32 : i32, i32
  }
  func.func @transform_1(%arg0: i32) -> (i32, i32) {
    %c0_i32 = arith.constant 0 : i32
    %c0_i32_0 = arith.constant 0 : i32
    %c0_i32_1 = arith.constant 0 : i32
    return %c0_i32, %c0_i32_0 : i32, i32
  }
  func.func @transform_2(%arg0: i32) -> (i32, i32) {
    %c0_i32 = arith.constant 0 : i32
    %c0_i32_0 = arith.constant 0 : i32
    %c0_i32_1 = arith.constant 0 : i32
    return %c0_i32, %c0_i32_0 : i32, i32
  }
  func.func @transform_3(%arg0: i32) -> (i32, i32) {
    %c0_i32 = arith.constant 0 : i32
    %c0_i32_0 = arith.constant 0 : i32
    %c0_i32_1 = arith.constant 0 : i32
    return %c0_i32, %c0_i32_0 : i32, i32
  }
  func.func @transform_4(%arg0: i32) -> (i32, i32) {
    %c0_i32 = arith.constant 0 : i32
    %c0_i32_0 = arith.constant 0 : i32
    return %arg0, %c0_i32 : i32, i32
  }
}

</mosaic_0001>

<bundles_post_ra>
// kernel: gcn_model_vae_forward.7
= control target key start
LH: loop header
LB: loop body
LE: loop exit
PB: predicated region body
PF: predicated region fallthrough
CT: control target
= control target key end

     0   :  { %s1029_s15 = smov 0   ;;  %s1164_s0 = inlined_call_operand.vmem [shape: bf16[256,256], index: 0, kind: input, shape index: {}]   ;;  %s1165_s1 = inlined_call_operand.vmem [shape: bf16[256,128], index: 1, kind: input, shape index: {}]   ;;  %s1166_s2 = inlined_call_operand.vmem [shape: bf16[128,128], index: 2, kind: input, shape index: {}]   ;;  %s1167_s3 = inlined_call_operand.vmem [shape: f32[1,128], index: 3, kind: input, shape index: {}]   ;;  %s1168_s4 = inlined_call_operand.vmem [shape: f32[256,128], index: 4, kind: output, shape index: {}]  }
   0x1 LB: > { %s774_s16 = sadd.s32 4294967295, %s1002_s15   ;;  %p778_p0 = scmp.ge.s32.totalorder %s1002_s15, 1  ;;  %s1002_s15 = sphi %s1029_s15, %s14_s15  }
   0x2   : > { %p164_p1 = scmp.lt.s32.totalorder %s1002_s15, 3 }
   0x4   : > { %p165_p2 = pnand %p778_p0, %p164_p1 }
   0x5   : > { %v948_v0 = vld [vmem:[%s1165_s1 + $0x40] sm:$0xff] (!%p165_p2)   ;;  %s779_s19 = sshll.u32 (!%p165_p2), %s774_s16, 4  ;;  %v950_v2 = vld [vmem:[%s1165_s1 + $0x48] sm:$0xff] (!%p165_p2)   ;;  %v952_v4 = vld [vmem:[%s1165_s1 + $0x50] sm:$0xff] (!%p165_p2)  }
   0x6   : > { %168 = sbr.rel (%p165_p2) target bundleno = 531 (0x213), region = 36  ;;  %v949_v1 = vld [vmem:[%s1165_s1] sm:$0xff] (!%p165_p2)   ;;  %828 = vmatprep.subr.bf16.mxu0 (!%p165_p2), %v948_v0  ;;  %v951_v3 = vld [vmem:[%s1165_s1 + $0x8] sm:$0xff] (!%p165_p2)   ;;  %p192_p3 = scmp.lt.s32.totalorder (!%p165_p2), %s779_s19, 31  ;;  %v953_v5 = vld [vmem:[%s1165_s1 + $0x10] sm:$0xff] (!%p165_p2)  }
   0x7   : > { %829 = vmatpush3.bf16.msra.mxu0 (!%p165_p2), %v949_v1  ;;  %v954_v6 = vld [vmem:[%s1165_s1 + $0x58] sm:$0xff] (!%p165_p2)   ;;  %v956_v8 = vld [vmem:[%s1165_s1 + $0x60] sm:$0xff] (!%p165_p2)   ;;  %v958_v10 = vld [vmem:[%s1165_s1 + $0x68] sm:$0xff] (!%p165_p2)  }
   0x8   : > { %830 = vmatprep.subr.bf16.mxu0 (!%p165_p2), %v950_v2  ;;  %v955_v7 = vld [vmem:[%s1165_s1 + $0x18] sm:$0xff] (!%p165_p2)   ;;  %v957_v9 = vld [vmem:[%s1165_s1 + $0x20] sm:$0xff] (!%p165_p2)   ;;  %v959_v12 = vld [vmem:[%s1165_s1 + $0x28] sm:$0xff] (!%p165_p2)  }
   0x9   : > { %v960_v13 = vld [vmem:[%s1165_s1 + $0x70] sm:$0xff] (!%p165_p2)   ;;  %v962_v15 = vld [vmem:[%s1165_s1 + $0x78] sm:$0xff] (!%p165_p2)   ;;  %v988_v17 = vld [vmem:[%s1166_s2] sm:$0xff] (!%p165_p2)  }
   0xa   : > { %v961_v14 = vld [vmem:[%s1165_s1 + $0x30] sm:$0xff] (!%p165_p2)   ;;  %v963_v16 = vld [vmem:[%s1165_s1 + $0x38] sm:$0xff] (!%p165_p2)   ;;  %v989_v19 = vld [vmem:[%s1166_s2 + $0x8] sm:$0xff] (!%p165_p2)   ;;  %908 = vmatprep.subr.bf16.mxu1 (!%p165_p2), %v988_v17 }
   0xb   : > { %831 = vmatpush3.bf16.msra.mxu0 (!%p165_p2), %v951_v3  ;;  %909 = vmatpush3.bf16.msra.mxu1 (!%p165_p2), %v988_v17  ;;  %v990_v21 = vld [vmem:[%s1166_s2 + $0x10] sm:$0xff] (!%p165_p2)   ;;  %v991_v22 = vld [vmem:[%s1166_s2 + $0x18] sm:$0xff] (!%p165_p2)   ;;  %v992_v36 = vld [vmem:[%s1166_s2 + $0x20] sm:$0xff] (!%p165_p2)  }
   0xc   : > { %832 = vmatprep.subr.bf16.mxu0 (!%p165_p2), %v952_v4  ;;  %910 = vmatprep.subr.bf16.mxu1 (!%p165_p2), %v989_v19  ;;  %v993_v37 = vld [vmem:[%s1166_s2 + $0x28] sm:$0xff] (!%p165_p2)   ;;  %v994_v38 = vld [vmem:[%s1166_s2 + $0x30] sm:$0xff] (!%p165_p2)   ;;  %v995_v39 = vld [vmem:[%s1166_s2 + $0x38] sm:$0xff] (!%p165_p2)  }
   0xd   : > { %s1170_s19 = smov (!%p192_p3, %s779_s19), 31 }
   0xe   : > { %s827_s8 = sshll.u32 %s1170_s19, 3 }
   0xf   : > { %833 = vmatpush3.bf16.msra.mxu0 %v953_v5  ;;  %s1072_s13 = scalar_lea.vmem %s1164_s0, %s827_s8  ;;  %911 = vmatpush3.bf16.msra.mxu1 %v989_v19  ;;  %s1143_s27 = scalar_lea.vmem %s1168_s4, %s827_s8 }
  0x10   : > { %834 = vmatprep.subr.bf16.mxu0 %v954_v6  ;;  %v966_v11 = vld [vmem:[%s1072_s13 + $0x4] ss:$8 sps:$4 sm:$0xff]   ;;  %v964_v18 = vld [vmem:[%s1072_s13] ss:$8 sps:$4 sm:$0xff]   ;;  %v967_v20 = vld [vmem:[%s1072_s13 + $0x14] ss:$8 sps:$4 sm:$0xff]   ;;  %912 = vmatprep.subr.bf16.mxu1 %v990_v21 }
  0x11   : > { %461 = vmatprep.mubr.bf16.mxu0 %v966_v11  ;;  %v969_v23 = vld [vmem:[%s1072_s13 + $0x10] ss:$8 sps:$4 sm:$0xff]   ;;  %v970_v24 = vld [vmem:[%s1072_s13 + $0x24] ss:$8 sps:$4 sm:$0xff]   ;;  %v972_v25 = vld [vmem:[%s1072_s13 + $0x20] ss:$8 sps:$4 sm:$0xff]  }
  0x12   : > { %v973_v26 = vld [vmem:[%s1072_s13 + $0x34] ss:$8 sps:$4 sm:$0xff]   ;;  %v975_v27 = vld [vmem:[%s1072_s13 + $0x30] ss:$8 sps:$4 sm:$0xff]   ;;  %v976_v28 = vld [vmem:[%s1072_s13 + $0x44] ss:$8 sps:$4 sm:$0xff]  }
  0x13   : > { %835 = vmatpush3.bf16.msra.mxu0 %v955_v7  ;;  %913 = vmatpush3.bf16.msra.mxu1 %v990_v21  ;;  %v978_v29 = vld [vmem:[%s1072_s13 + $0x40] ss:$8 sps:$4 sm:$0xff]   ;;  %v979_v30 = vld [vmem:[%s1072_s13 + $0x54] ss:$8 sps:$4 sm:$0xff]   ;;  %v981_v31 = vld [vmem:[%s1072_s13 + $0x50] ss:$8 sps:$4 sm:$0xff]  }
  0x14   : > { %836 = vmatprep.subr.bf16.mxu0 %v956_v8  ;;  %914 = vmatprep.subr.bf16.mxu1 %v991_v22  ;;  %v982_v32 = vld [vmem:[%s1072_s13 + $0x64] ss:$8 sps:$4 sm:$0xff]   ;;  %v984_v33 = vld [vmem:[%s1072_s13 + $0x60] ss:$8 sps:$4 sm:$0xff]   ;;  %v985_v34 = vld [vmem:[%s1072_s13 + $0x74] ss:$8 sps:$4 sm:$0xff]  }
  0x15   : > { %v987_v35 = vld [vmem:[%s1072_s13 + $0x70] ss:$8 sps:$4 sm:$0xff]  }
  0x17   : > { %837 = vmatpush3.bf16.msra.mxu0 %v957_v9  ;;  %915 = vmatpush3.bf16.msra.mxu1 %v991_v22 }
  0x18   : > { %838 = vmatprep.subr.bf16.mxu0 %v958_v10  ;;  %916 = vmatprep.subr.bf16.mxu1 %v992_v36 }
  0x1b   : > { %839 = vmatpush3.bf16.msra.mxu0 %v959_v12  ;;  %917 = vmatpush3.bf16.msra.mxu1 %v992_v36 }
  0x1c   : > { %840 = vmatprep.subr.bf16.mxu0 %v960_v13  ;;  %918 = vmatprep.subr.bf16.mxu1 %v993_v37 }
  0x1f   : > { %841 = vmatpush3.bf16.msra.mxu0 %v961_v14  ;;  %919 = vmatpush3.bf16.msra.mxu1 %v993_v37 }
  0x20   : > { %842 = vmatprep.subr.bf16.mxu0 %v962_v15  ;;  %920 = vmatprep.subr.bf16.mxu1 %v994_v38 }
  0x23   : > { %843 = vmatpush3.bf16.msra.mxu0 %v963_v16  ;;  %921 = vmatpush3.bf16.msra.mxu1 %v994_v38 }
  0x24   : > { %922 = vmatprep.subr.bf16.mxu1 %v995_v39 }
  0x26   : > { %462 = vmatmul.mubr.bf16.vlgmr.msra.gmra.mrb[0].mxu0 %v964_v18 }
  0x27   : > { %469 = vmatprep.mubr.bf16.mxu0 %v967_v20  ;;  %923 = vmatpush3.bf16.msra.mxu1 %v995_v39 }
  0x2e   : > { %470 = vmatmul.mubr.bf16.gmra.mrb[4].mxu0 %v969_v23 }
  0x2f   : > { %477 = vmatprep.mubr.bf16.mxu0 %v970_v24 }
  0x36   : > { %478 = vmatmul.mubr.bf16.gmra.mrb[8].mxu0 %v972_v25 }
  0x37   : > { %485 = vmatprep.mubr.bf16.mxu0 %v973_v26 }
  0x3e   : > { %486 = vmatmul.mubr.bf16.gmra.mrb[12].mxu0 %v975_v27 }
  0x3f   : > { %493 = vmatprep.mubr.bf16.mxu0 %v976_v28 }
  0x46   : > { %494 = vmatmul.mubr.bf16.gmra.mrb[16].mxu0 %v978_v29 }
  0x47   : > { %501 = vmatprep.mubr.bf16.mxu0 %v979_v30 }
  0x4e   : > { %502 = vmatmul.mubr.bf16.gmra.mrb[20].mxu0 %v981_v31 }
  0x4f   : > { %509 = vmatprep.mubr.bf16.mxu0 %v982_v32  ;;  %v816_v32 = vld [vmem:[%s1167_s3] ss:$0 sm:$0xff] }
  0x56   : > { %510 = vmatmul.mubr.bf16.gmra.mrb[24].mxu0 %v984_v33 }
  0x57   : > { %517 = vmatprep.mubr.bf16.mxu0 %v985_v34 }
  0x5e   : > { %518 = vmatmul.mubr.bf16.gmra.mrb[28].mxu0 %v987_v35 }
  0xf9   : > { %v844_v40 = vpop.f32.mrb[0].mxu0 }
  0xfa   : > { %v845_v41 = vpop.f32.mrb[1].mxu0 }
  0xfb   : > { %v846_v42 = vadd.f32 %v845_v41, %v844_v40  ;;  %v847_v43 = vpop.f32.mrb[2].mxu0 }
  0xfc   : > { %v848_v44 = vpop.f32.mrb[3].mxu0 }
  0xfd   : > { %v849_v45 = vadd.f32 %v848_v44, %v847_v43 }
  0xff   : > { %v526_v46 = vpack.c.bf16 %v849_v45, %v846_v42 }
 0x101   : > { %v850_v47 = vpop.f32.mrb[4].mxu0  ;;  %924 = vmatprep.mubr.bf16.mxu1 %v526_v46 }
 0x102   : > { %v851_v48 = vpop.f32.mrb[5].mxu0 }
 0x103   : > { %v852_v49 = vadd.f32 %v851_v48, %v850_v47  ;;  %v853_v50 = vpop.f32.mrb[6].mxu0 }
 0x104   : > { %v854_v51 = vpop.f32.mrb[7].mxu0 }
 0x105   : > { %v855_v52 = vadd.f32 %v854_v51, %v853_v50 }
 0x107   : > { %v527_v53 = vpack.c.bf16 %v855_v52, %v852_v49 }
 0x109   : > { %v856_v54 = vpop.f32.mrb[8].mxu0  ;;  %925 = vmatmul.mubr.bf16.vlgmr.msra.gmra.mrb[0].mxu1 %v527_v53 }
 0x10a   : > { %v857_v55 = vpop.f32.mrb[9].mxu0 }
 0x10b   : > { %v858_v56 = vadd.f32 %v857_v55, %v856_v54  ;;  %v859_v57 = vpop.f32.mrb[10].mxu0 }
 0x10c   : > { %v860_v58 = vpop.f32.mrb[11].mxu0 }
 0x10d   : > { %v861_v59 = vadd.f32 %v860_v58, %v859_v57 }
 0x10f   : > { %v528_v60 = vpack.c.bf16 %v861_v59, %v858_v56 }
 0x111   : > { %v862_v61 = vpop.f32.mrb[12].mxu0  ;;  %928 = vmatprep.mubr.bf16.mxu1 %v528_v60 }
 0x112   : > { %v863_v62 = vpop.f32.mrb[13].mxu0 }
 0x113   : > { %v864_v63 = vadd.f32 %v863_v62, %v862_v61  ;;  %v865_v0 = vpop.f32.mrb[14].mxu0 }
 0x114   : > { %v866_v1 = vpop.f32.mrb[15].mxu0 }
 0x115   : > { %v867_v2 = vadd.f32 %v866_v1, %v865_v0 }
 0x117   : > { %v529_v3 = vpack.c.bf16 %v867_v2, %v864_v63 }
 0x119   : > { %v868_v4 = vpop.f32.mrb[16].mxu0  ;;  %929 = vmatmul.mubr.bf16.gmra.mrb[4].mxu1 %v529_v3 }
 0x11a   : > { %v869_v5 = vpop.f32.mrb[17].mxu0 }
 0x11b   : > { %v870_v6 = vadd.f32 %v869_v5, %v868_v4  ;;  %v871_v7 = vpop.f32.mrb[18].mxu0 }
 0x11c   : > { %v872_v8 = vpop.f32.mrb[19].mxu0 }
 0x11d   : > { %v873_v9 = vadd.f32 %v872_v8, %v871_v7 }
 0x11f   : > { %v530_v10 = vpack.c.bf16 %v873_v9, %v870_v6 }
 0x121   : > { %v874_v11 = vpop.f32.mrb[20].mxu0  ;;  %932 = vmatprep.mubr.bf16.mxu1 %v530_v10 }
 0x122   : > { %v875_v12 = vpop.f32.mrb[21].mxu0 }
 0x123   : > { %v876_v13 = vadd.f32 %v875_v12, %v874_v11  ;;  %v877_v14 = vpop.f32.mrb[22].mxu0 }
 0x124   : > { %v878_v15 = vpop.f32.mrb[23].mxu0 }
 0x125   : > { %v879_v16 = vadd.f32 %v878_v15, %v877_v14 }
 0x127   : > { %v531_v17 = vpack.c.bf16 %v879_v16, %v876_v13 }
 0x129   : > { %v880_v18 = vpop.f32.mrb[24].mxu0  ;;  %933 = vmatmul.mubr.bf16.gmra.mrb[8].mxu1 %v531_v17 }
 0x12a   : > { %v881_v19 = vpop.f32.mrb[25].mxu0 }
 0x12b   : > { %v882_v20 = vadd.f32 %v881_v19, %v880_v18  ;;  %v883_v21 = vpop.f32.mrb[26].mxu0 }
 0x12c   : > { %v884_v22 = vpop.f32.mrb[27].mxu0 }
 0x12d   : > { %v885_v23 = vadd.f32 %v884_v22, %v883_v21 }
 0x12f   : > { %v532_v24 = vpack.c.bf16 %v885_v23, %v882_v20 }
 0x131   : > { %v886_v25 = vpop.f32.mrb[28].mxu0  ;;  %936 = vmatprep.mubr.bf16.mxu1 %v532_v24 }
 0x132   : > { %v887_v26 = vpop.f32.mrb[29].mxu0 }
 0x133   : > { %v888_v27 = vadd.f32 %v887_v26, %v886_v25  ;;  %v889_v28 = vpop.f32.mrb[30].mxu0 }
 0x134   : > { %v890_v29 = vpop.f32.mrb[31].mxu0 }
 0x135   : > { %v891_v30 = vadd.f32 %v890_v29, %v889_v28 }
 0x137   : > { %v533_v31 = vpack.c.bf16 %v891_v30, %v888_v27 }
 0x139   : > { %937 = vmatmul.mubr.bf16.gmra.mrb[12].mxu1 %v533_v31 }
 0x1dc   : > { %v926_v33 = vpop.f32.mrb[0].mxu1 }
 0x1dd   : > { %v648_v34 = vadd.f32 %v926_v33, %v816_v32  ;;  %v639_v35 = vpop.f32.mrb[1].mxu1 }
 0x1de   : > { %v640_v36 = vadd.f32 %v816_v32, %v639_v35  ;;  %v927_v37 = vpop.f32.mrb[2].mxu1 }
 0x1df   : > { %704 = vst [vmem:[%s1143_s27 + $0x10] sm:$0xff] %v648_v34  ;;  %v651_v38 = vadd.f32 %v927_v37, %v816_v32  ;;  %v642_v39 = vpop.f32.mrb[3].mxu1 }
 0x1e0   : > { %702 = vst [vmem:[%s1143_s27] sm:$0xff] %v640_v36  ;;  %v643_v40 = vadd.f32 %v816_v32, %v642_v39 }
 0x1e1   : > { %705 = vst [vmem:[%s1143_s27 + $0x18] sm:$0xff] %v651_v38 }
 0x1e2   : > { %703 = vst [vmem:[%s1143_s27 + $0x8] sm:$0xff] %v643_v40 }
 0x1ec   : > { %v930_v41 = vpop.f32.mrb[4].mxu1 }
 0x1ed   : > { %v664_v42 = vadd.f32 %v930_v41, %v816_v32  ;;  %v655_v43 = vpop.f32.mrb[5].mxu1 }
 0x1ee   : > { %v656_v44 = vadd.f32 %v816_v32, %v655_v43  ;;  %v931_v45 = vpop.f32.mrb[6].mxu1 }
 0x1ef   : > { %708 = vst [vmem:[%s1143_s27 + $0x30] sm:$0xff] %v664_v42  ;;  %v667_v46 = vadd.f32 %v931_v45, %v816_v32  ;;  %v658_v47 = vpop.f32.mrb[7].mxu1 }
 0x1f0   : > { %706 = vst [vmem:[%s1143_s27 + $0x20] sm:$0xff] %v656_v44  ;;  %v659_v48 = vadd.f32 %v816_v32, %v658_v47 }
 0x1f1   : > { %709 = vst [vmem:[%s1143_s27 + $0x38] sm:$0xff] %v667_v46 }
 0x1f2   : > { %707 = vst [vmem:[%s1143_s27 + $0x28] sm:$0xff] %v659_v48 }
 0x1fc   : > { %v934_v49 = vpop.f32.mrb[8].mxu1 }
 0x1fd   : > { %v680_v50 = vadd.f32 %v934_v49, %v816_v32  ;;  %v671_v51 = vpop.f32.mrb[9].mxu1 }
 0x1fe   : > { %v672_v52 = vadd.f32 %v816_v32, %v671_v51  ;;  %v935_v53 = vpop.f32.mrb[10].mxu1 }
 0x1ff   : > { %712 = vst [vmem:[%s1143_s27 + $0x50] sm:$0xff] %v680_v50  ;;  %v683_v54 = vadd.f32 %v935_v53, %v816_v32  ;;  %v674_v55 = vpop.f32.mrb[11].mxu1 }
 0x200   : > { %710 = vst [vmem:[%s1143_s27 + $0x40] sm:$0xff] %v672_v52  ;;  %v675_v56 = vadd.f32 %v816_v32, %v674_v55 }
 0x201   : > { %713 = vst [vmem:[%s1143_s27 + $0x58] sm:$0xff] %v683_v54 }
 0x202   : > { %711 = vst [vmem:[%s1143_s27 + $0x48] sm:$0xff] %v675_v56 }
 0x20c   : > { %v938_v57 = vpop.f32.mrb[12].mxu1 }
 0x20d   : > { %v696_v58 = vadd.f32 %v938_v57, %v816_v32  ;;  %v687_v59 = vpop.f32.mrb[13].mxu1 }
 0x20e   : > { %v688_v60 = vadd.f32 %v816_v32, %v687_v59  ;;  %v939_v61 = vpop.f32.mrb[14].mxu1 }
 0x20f   : > { %716 = vst [vmem:[%s1143_s27 + $0x70] sm:$0xff] %v696_v58  ;;  %v699_v62 = vadd.f32 %v939_v61, %v816_v32  ;;  %v690_v63 = vpop.f32.mrb[15].mxu1 }
 0x210   : > { %714 = vst [vmem:[%s1143_s27 + $0x60] sm:$0xff] %v688_v60  ;;  %v691_v0 = vadd.f32 %v816_v32, %v690_v63 }
 0x211   : > { %717 = vst [vmem:[%s1143_s27 + $0x78] sm:$0xff] %v699_v62 }
 0x212   : > { %715 = vst [vmem:[%s1143_s27 + $0x68] sm:$0xff] %v691_v0 }
 0x213 PF: > { %s14_s15 = sadd.s32 1, %s1002_s15  }
 0x214   : > { %p11_p4 = scmp.ge.s32.totalorder %s14_s15, 4  }
 0x216   :  { %13 = sbr.rel (!%p11_p4) target bundleno = 1 (0x1), region = 66 }

// kernel: gcn_model_vae_forward.4
= control target key start
LH: loop header
LB: loop body
LE: loop exit
PB: predicated region body
PF: predicated region fallthrough
CT: control target
= control target key end

     0   :  { %s1188_s15 = smov 0   ;;  %s1312_s0 = inlined_call_operand.vmem [shape: bf16[256,256], index: 0, kind: input, shape index: {}]   ;;  %s1313_s1 = inlined_call_operand.vmem [shape: bf16[256,128], index: 1, kind: input, shape index: {}]   ;;  %s1314_s2 = inlined_call_operand.vmem [shape: bf16[128,128], index: 2, kind: input, shape index: {}]   ;;  %s1315_s3 = inlined_call_operand.vmem [shape: f32[1,128], index: 3, kind: input, shape index: {}]   ;;  %s1316_s4 = inlined_call_operand.vmem [shape: bf16[256,128], index: 4, kind: output, shape index: {}]  }
   0x1 LB: > { %s854_s16 = sadd.s32 4294967295, %s1161_s15   ;;  %p858_p0 = scmp.ge.s32.totalorder %s1161_s15, 1  ;;  %s1161_s15 = sphi %s1188_s15, %s14_s15  }
   0x2   : > { %p164_p1 = scmp.lt.s32.totalorder %s1161_s15, 3 }
   0x4   : > { %p165_p2 = pnand %p858_p0, %p164_p1 }
   0x5   : > { %v1107_v0 = vld [vmem:[%s1313_s1 + $0x40] sm:$0xff] (!%p165_p2)   ;;  %s859_s19 = sshll.u32 (!%p165_p2), %s854_s16, 4  ;;  %v1109_v2 = vld [vmem:[%s1313_s1 + $0x48] sm:$0xff] (!%p165_p2)   ;;  %v1111_v4 = vld [vmem:[%s1313_s1 + $0x50] sm:$0xff] (!%p165_p2)  }
   0x6   : > { %168 = sbr.rel (%p165_p2) target bundleno = 535 (0x217), region = 36  ;;  %v1108_v1 = vld [vmem:[%s1313_s1] sm:$0xff] (!%p165_p2)   ;;  %987 = vmatprep.subr.bf16.mxu0 (!%p165_p2), %v1107_v0  ;;  %v1110_v3 = vld [vmem:[%s1313_s1 + $0x8] sm:$0xff] (!%p165_p2)   ;;  %p192_p3 = scmp.lt.s32.totalorder (!%p165_p2), %s859_s19, 31  ;;  %v1112_v5 = vld [vmem:[%s1313_s1 + $0x10] sm:$0xff] (!%p165_p2)  }
   0x7   : > { %988 = vmatpush3.bf16.msra.mxu0 (!%p165_p2), %v1108_v1  ;;  %v1113_v6 = vld [vmem:[%s1313_s1 + $0x58] sm:$0xff] (!%p165_p2)   ;;  %v1115_v8 = vld [vmem:[%s1313_s1 + $0x60] sm:$0xff] (!%p165_p2)   ;;  %v1117_v10 = vld [vmem:[%s1313_s1 + $0x68] sm:$0xff] (!%p165_p2)  }
   0x8   : > { %989 = vmatprep.subr.bf16.mxu0 (!%p165_p2), %v1109_v2  ;;  %v1114_v7 = vld [vmem:[%s1313_s1 + $0x18] sm:$0xff] (!%p165_p2)   ;;  %v1116_v9 = vld [vmem:[%s1313_s1 + $0x20] sm:$0xff] (!%p165_p2)   ;;  %v1118_v12 = vld [vmem:[%s1313_s1 + $0x28] sm:$0xff] (!%p165_p2)  }
   0x9   : > { %v1119_v13 = vld [vmem:[%s1313_s1 + $0x70] sm:$0xff] (!%p165_p2)   ;;  %v1121_v15 = vld [vmem:[%s1313_s1 + $0x78] sm:$0xff] (!%p165_p2)   ;;  %v1147_v17 = vld [vmem:[%s1314_s2] sm:$0xff] (!%p165_p2)  }
   0xa   : > { %v1120_v14 = vld [vmem:[%s1313_s1 + $0x30] sm:$0xff] (!%p165_p2)   ;;  %v1122_v16 = vld [vmem:[%s1313_s1 + $0x38] sm:$0xff] (!%p165_p2)   ;;  %v1148_v19 = vld [vmem:[%s1314_s2 + $0x8] sm:$0xff] (!%p165_p2)   ;;  %1067 = vmatprep.subr.bf16.mxu1 (!%p165_p2), %v1147_v17 }
   0xb   : > { %990 = vmatpush3.bf16.msra.mxu0 (!%p165_p2), %v1110_v3  ;;  %1068 = vmatpush3.bf16.msra.mxu1 (!%p165_p2), %v1147_v17  ;;  %v1149_v21 = vld [vmem:[%s1314_s2 + $0x10] sm:$0xff] (!%p165_p2)   ;;  %v1150_v22 = vld [vmem:[%s1314_s2 + $0x18] sm:$0xff] (!%p165_p2)   ;;  %v1151_v36 = vld [vmem:[%s1314_s2 + $0x20] sm:$0xff] (!%p165_p2)  }
   0xc   : > { %991 = vmatprep.subr.bf16.mxu0 (!%p165_p2), %v1111_v4  ;;  %1069 = vmatprep.subr.bf16.mxu1 (!%p165_p2), %v1148_v19  ;;  %v1152_v37 = vld [vmem:[%s1314_s2 + $0x28] sm:$0xff] (!%p165_p2)   ;;  %v1153_v38 = vld [vmem:[%s1314_s2 + $0x30] sm:$0xff] (!%p165_p2)   ;;  %v1154_v39 = vld [vmem:[%s1314_s2 + $0x38] sm:$0xff] (!%p165_p2)  }
   0xd   : > { %s1318_s19 = smov (!%p192_p3, %s859_s19), 31 }
   0xe   : > { %s923_s8 = sshll.u32 %s1318_s19, 3  ;;  %s863_s24 = sshll.u32 %s1318_s19, 2 }
   0xf   : > { %992 = vmatpush3.bf16.msra.mxu0 %v1112_v5  ;;  %s1229_s13 = scalar_lea.vmem %s1312_s0, %s923_s8  ;;  %1070 = vmatpush3.bf16.msra.mxu1 %v1148_v19  ;;  %s1299_s27 = scalar_lea.vmem %s1316_s4, %s863_s24 }
  0x10   : > { %993 = vmatprep.subr.bf16.mxu0 %v1113_v6  ;;  %v1125_v11 = vld [vmem:[%s1229_s13 + $0x4] ss:$8 sps:$4 sm:$0xff]   ;;  %v1123_v18 = vld [vmem:[%s1229_s13] ss:$8 sps:$4 sm:$0xff]   ;;  %v1126_v20 = vld [vmem:[%s1229_s13 + $0x14] ss:$8 sps:$4 sm:$0xff]   ;;  %1071 = vmatprep.subr.bf16.mxu1 %v1149_v21 }
  0x11   : > { %461 = vmatprep.mubr.bf16.mxu0 %v1125_v11  ;;  %v1128_v23 = vld [vmem:[%s1229_s13 + $0x10] ss:$8 sps:$4 sm:$0xff]   ;;  %v1129_v24 = vld [vmem:[%s1229_s13 + $0x24] ss:$8 sps:$4 sm:$0xff]   ;;  %v1131_v25 = vld [vmem:[%s1229_s13 + $0x20] ss:$8 sps:$4 sm:$0xff]  }
  0x12   : > { %v1132_v26 = vld [vmem:[%s1229_s13 + $0x34] ss:$8 sps:$4 sm:$0xff]   ;;  %v1134_v27 = vld [vmem:[%s1229_s13 + $0x30] ss:$8 sps:$4 sm:$0xff]   ;;  %v1135_v28 = vld [vmem:[%s1229_s13 + $0x44] ss:$8 sps:$4 sm:$0xff]  }
  0x13   : > { %994 = vmatpush3.bf16.msra.mxu0 %v1114_v7  ;;  %1072 = vmatpush3.bf16.msra.mxu1 %v1149_v21  ;;  %v1137_v29 = vld [vmem:[%s1229_s13 + $0x40] ss:$8 sps:$4 sm:$0xff]   ;;  %v1138_v30 = vld [vmem:[%s1229_s13 + $0x54] ss:$8 sps:$4 sm:$0xff]   ;;  %v1140_v31 = vld [vmem:[%s1229_s13 + $0x50] ss:$8 sps:$4 sm:$0xff]  }
  0x14   : > { %995 = vmatprep.subr.bf16.mxu0 %v1115_v8  ;;  %1073 = vmatprep.subr.bf16.mxu1 %v1150_v22  ;;  %v1141_v32 = vld [vmem:[%s1229_s13 + $0x64] ss:$8 sps:$4 sm:$0xff]   ;;  %v1143_v33 = vld [vmem:[%s1229_s13 + $0x60] ss:$8 sps:$4 sm:$0xff]   ;;  %v1144_v34 = vld [vmem:[%s1229_s13 + $0x74] ss:$8 sps:$4 sm:$0xff]  }
  0x15   : > { %v1146_v35 = vld [vmem:[%s1229_s13 + $0x70] ss:$8 sps:$4 sm:$0xff]  }
  0x17   : > { %996 = vmatpush3.bf16.msra.mxu0 %v1116_v9  ;;  %1074 = vmatpush3.bf16.msra.mxu1 %v1150_v22 }
  0x18   : > { %997 = vmatprep.subr.bf16.mxu0 %v1117_v10  ;;  %1075 = vmatprep.subr.bf16.mxu1 %v1151_v36 }
  0x1b   : > { %998 = vmatpush3.bf16.msra.mxu0 %v1118_v12  ;;  %1076 = vmatpush3.bf16.msra.mxu1 %v1151_v36 }
  0x1c   : > { %999 = vmatprep.subr.bf16.mxu0 %v1119_v13  ;;  %1077 = vmatprep.subr.bf16.mxu1 %v1152_v37 }
  0x1f   : > { %1000 = vmatpush3.bf16.msra.mxu0 %v1120_v14  ;;  %1078 = vmatpush3.bf16.msra.mxu1 %v1152_v37 }
  0x20   : > { %1001 = vmatprep.subr.bf16.mxu0 %v1121_v15  ;;  %1079 = vmatprep.subr.bf16.mxu1 %v1153_v38 }
  0x23   : > { %1002 = vmatpush3.bf16.msra.mxu0 %v1122_v16  ;;  %1080 = vmatpush3.bf16.msra.mxu1 %v1153_v38 }
  0x24   : > { %1081 = vmatprep.subr.bf16.mxu1 %v1154_v39 }
  0x26   : > { %462 = vmatmul.mubr.bf16.vlgmr.msra.gmra.mrb[0].mxu0 %v1123_v18 }
  0x27   : > { %469 = vmatprep.mubr.bf16.mxu0 %v1126_v20  ;;  %1082 = vmatpush3.bf16.msra.mxu1 %v1154_v39 }
  0x2e   : > { %470 = vmatmul.mubr.bf16.gmra.mrb[4].mxu0 %v1128_v23 }
  0x2f   : > { %477 = vmatprep.mubr.bf16.mxu0 %v1129_v24 }
  0x36   : > { %478 = vmatmul.mubr.bf16.gmra.mrb[8].mxu0 %v1131_v25 }
  0x37   : > { %485 = vmatprep.mubr.bf16.mxu0 %v1132_v26 }
  0x3e   : > { %486 = vmatmul.mubr.bf16.gmra.mrb[12].mxu0 %v1134_v27 }
  0x3f   : > { %493 = vmatprep.mubr.bf16.mxu0 %v1135_v28 }
  0x46   : > { %494 = vmatmul.mubr.bf16.gmra.mrb[16].mxu0 %v1137_v29 }
  0x47   : > { %501 = vmatprep.mubr.bf16.mxu0 %v1138_v30 }
  0x4e   : > { %502 = vmatmul.mubr.bf16.gmra.mrb[20].mxu0 %v1140_v31 }
  0x4f   : > { %509 = vmatprep.mubr.bf16.mxu0 %v1141_v32  ;;  %v896_v32 = vld [vmem:[%s1315_s3] ss:$0 sm:$0xff] }
  0x56   : > { %510 = vmatmul.mubr.bf16.gmra.mrb[24].mxu0 %v1143_v33 }
  0x57   : > { %517 = vmatprep.mubr.bf16.mxu0 %v1144_v34 }
  0x5e   : > { %518 = vmatmul.mubr.bf16.gmra.mrb[28].mxu0 %v1146_v35 }
  0xf9   : > { %v1003_v40 = vpop.f32.mrb[0].mxu0 }
  0xfa   : > { %v1004_v41 = vpop.f32.mrb[1].mxu0 }
  0xfb   : > { %v1005_v42 = vadd.f32 %v1004_v41, %v1003_v40  ;;  %v1006_v43 = vpop.f32.mrb[2].mxu0 }
  0xfc   : > { %v1007_v44 = vpop.f32.mrb[3].mxu0 }
  0xfd   : > { %v1008_v45 = vadd.f32 %v1007_v44, %v1006_v43 }
  0xff   : > { %v526_v46 = vpack.c.bf16 %v1008_v45, %v1005_v42 }
 0x101   : > { %v1009_v47 = vpop.f32.mrb[4].mxu0  ;;  %1083 = vmatprep.mubr.bf16.mxu1 %v526_v46 }
 0x102   : > { %v1010_v48 = vpop.f32.mrb[5].mxu0 }
 0x103   : > { %v1011_v49 = vadd.f32 %v1010_v48, %v1009_v47  ;;  %v1012_v50 = vpop.f32.mrb[6].mxu0 }
 0x104   : > { %v1013_v51 = vpop.f32.mrb[7].mxu0 }
 0x105   : > { %v1014_v52 = vadd.f32 %v1013_v51, %v1012_v50 }
 0x107   : > { %v527_v53 = vpack.c.bf16 %v1014_v52, %v1011_v49 }
 0x109   : > { %v1015_v54 = vpop.f32.mrb[8].mxu0  ;;  %1084 = vmatmul.mubr.bf16.vlgmr.msra.gmra.mrb[0].mxu1 %v527_v53 }
 0x10a   : > { %v1016_v55 = vpop.f32.mrb[9].mxu0 }
 0x10b   : > { %v1017_v56 = vadd.f32 %v1016_v55, %v1015_v54  ;;  %v1018_v57 = vpop.f32.mrb[10].mxu0 }
 0x10c   : > { %v1019_v58 = vpop.f32.mrb[11].mxu0 }
 0x10d   : > { %v1020_v59 = vadd.f32 %v1019_v58, %v1018_v57 }
 0x10f   : > { %v528_v60 = vpack.c.bf16 %v1020_v59, %v1017_v56 }
 0x111   : > { %v1021_v61 = vpop.f32.mrb[12].mxu0  ;;  %1087 = vmatprep.mubr.bf16.mxu1 %v528_v60 }
 0x112   : > { %v1022_v62 = vpop.f32.mrb[13].mxu0 }
 0x113   : > { %v1023_v63 = vadd.f32 %v1022_v62, %v1021_v61  ;;  %v1024_v0 = vpop.f32.mrb[14].mxu0 }
 0x114   : > { %v1025_v1 = vpop.f32.mrb[15].mxu0 }
 0x115   : > { %v1026_v2 = vadd.f32 %v1025_v1, %v1024_v0 }
 0x117   : > { %v529_v3 = vpack.c.bf16 %v1026_v2, %v1023_v63 }
 0x119   : > { %v1027_v4 = vpop.f32.mrb[16].mxu0  ;;  %1088 = vmatmul.mubr.bf16.gmra.mrb[4].mxu1 %v529_v3 }
 0x11a   : > { %v1028_v5 = vpop.f32.mrb[17].mxu0 }
 0x11b   : > { %v1029_v6 = vadd.f32 %v1028_v5, %v1027_v4  ;;  %v1030_v7 = vpop.f32.mrb[18].mxu0 }
 0x11c   : > { %v1031_v8 = vpop.f32.mrb[19].mxu0 }
 0x11d   : > { %v1032_v9 = vadd.f32 %v1031_v8, %v1030_v7 }
 0x11f   : > { %v530_v10 = vpack.c.bf16 %v1032_v9, %v1029_v6 }
 0x121   : > { %v1033_v11 = vpop.f32.mrb[20].mxu0  ;;  %1091 = vmatprep.mubr.bf16.mxu1 %v530_v10 }
 0x122   : > { %v1034_v12 = vpop.f32.mrb[21].mxu0 }
 0x123   : > { %v1035_v13 = vadd.f32 %v1034_v12, %v1033_v11  ;;  %v1036_v14 = vpop.f32.mrb[22].mxu0 }
 0x124   : > { %v1037_v15 = vpop.f32.mrb[23].mxu0 }
 0x125   : > { %v1038_v16 = vadd.f32 %v1037_v15, %v1036_v14 }
 0x127   : > { %v531_v17 = vpack.c.bf16 %v1038_v16, %v1035_v13 }
 0x129   : > { %v1039_v18 = vpop.f32.mrb[24].mxu0  ;;  %1092 = vmatmul.mubr.bf16.gmra.mrb[8].mxu1 %v531_v17 }
 0x12a   : > { %v1040_v19 = vpop.f32.mrb[25].mxu0 }
 0x12b   : > { %v1041_v20 = vadd.f32 %v1040_v19, %v1039_v18  ;;  %v1042_v21 = vpop.f32.mrb[26].mxu0 }
 0x12c   : > { %v1043_v22 = vpop.f32.mrb[27].mxu0 }
 0x12d   : > { %v1044_v23 = vadd.f32 %v1043_v22, %v1042_v21 }
 0x12f   : > { %v532_v24 = vpack.c.bf16 %v1044_v23, %v1041_v20 }
 0x131   : > { %v1045_v25 = vpop.f32.mrb[28].mxu0  ;;  %1095 = vmatprep.mubr.bf16.mxu1 %v532_v24 }
 0x132   : > { %v1046_v26 = vpop.f32.mrb[29].mxu0 }
 0x133   : > { %v1047_v27 = vadd.f32 %v1046_v26, %v1045_v25  ;;  %v1048_v28 = vpop.f32.mrb[30].mxu0 }
 0x134   : > { %v1049_v29 = vpop.f32.mrb[31].mxu0 }
 0x135   : > { %v1050_v30 = vadd.f32 %v1049_v29, %v1048_v28 }
 0x137   : > { %v533_v31 = vpack.c.bf16 %v1050_v30, %v1047_v27 }
 0x139   : > { %1096 = vmatmul.mubr.bf16.gmra.mrb[12].mxu1 %v533_v31 }
 0x1dc   : > { %v1085_v33 = vpop.f32.mrb[0].mxu1 }
 0x1dd   : > { %v648_v34 = vadd.f32 %v1085_v33, %v896_v32  ;;  %v639_v35 = vpop.f32.mrb[1].mxu1 }
 0x1de   : > { %v640_v36 = vadd.f32 %v896_v32, %v639_v35  ;;  %v1086_v37 = vpop.f32.mrb[2].mxu1 }
 0x1df   : > { %v651_v38 = vadd.f32 %v1086_v37, %v896_v32  ;;  %v642_v39 = vpop.f32.mrb[3].mxu1  ;;  %v704_v41 = vmax.f32 %v648_v34, 0.0 }
 0x1e0   : > { %v643_v40 = vadd.f32 %v896_v32, %v642_v39  ;;  %v702_v43 = vmax.f32 %v640_v36, 0.0 }
 0x1e1   : > { %v705_v42 = vmax.f32 %v651_v38, 0.0 }
 0x1e2   : > { %v703_v44 = vmax.f32 %v643_v40, 0.0 }
 0x1e3   : > { %v948_v45 = vpack.c.bf16 %v705_v42, %v704_v41 }
 0x1e4   : > { %v943_v46 = vpack.c.bf16 %v703_v44, %v702_v43 }
 0x1e5   : > { %980 = vst [vmem:[%s1299_s27 + $0x8] sm:$0xff] %v948_v45  }
 0x1e6   : > { %944 = vst [vmem:[%s1299_s27] sm:$0xff] %v943_v46  }
 0x1ec   : > { %v1089_v47 = vpop.f32.mrb[4].mxu1 }
 0x1ed   : > { %v664_v48 = vadd.f32 %v1089_v47, %v896_v32  ;;  %v655_v49 = vpop.f32.mrb[5].mxu1 }
 0x1ee   : > { %v656_v50 = vadd.f32 %v896_v32, %v655_v49  ;;  %v1090_v51 = vpop.f32.mrb[6].mxu1 }
 0x1ef   : > { %v667_v52 = vadd.f32 %v1090_v51, %v896_v32  ;;  %v658_v53 = vpop.f32.mrb[7].mxu1  ;;  %v708_v55 = vmax.f32 %v664_v48, 0.0 }
 0x1f0   : > { %v659_v54 = vadd.f32 %v896_v32, %v658_v53  ;;  %v706_v57 = vmax.f32 %v656_v50, 0.0 }
 0x1f1   : > { %v709_v56 = vmax.f32 %v667_v52, 0.0 }
 0x1f2   : > { %v707_v58 = vmax.f32 %v659_v54, 0.0 }
 0x1f3   : > { %v958_v59 = vpack.c.bf16 %v709_v56, %v708_v55 }
 0x1f4   : > { %v953_v60 = vpack.c.bf16 %v707_v58, %v706_v57 }
 0x1f5   : > { %982 = vst [vmem:[%s1299_s27 + $0x18] sm:$0xff] %v958_v59  }
 0x1f6   : > { %981 = vst [vmem:[%s1299_s27 + $0x10] sm:$0xff] %v953_v60  }
 0x1fc   : > { %v1093_v61 = vpop.f32.mrb[8].mxu1 }
 0x1fd   : > { %v680_v62 = vadd.f32 %v1093_v61, %v896_v32  ;;  %v671_v63 = vpop.f32.mrb[9].mxu1 }
 0x1fe   : > { %v672_v0 = vadd.f32 %v896_v32, %v671_v63  ;;  %v1094_v1 = vpop.f32.mrb[10].mxu1 }
 0x1ff   : > { %v683_v2 = vadd.f32 %v1094_v1, %v896_v32  ;;  %v674_v3 = vpop.f32.mrb[11].mxu1  ;;  %v712_v5 = vmax.f32 %v680_v62, 0.0 }
 0x200   : > { %v675_v4 = vadd.f32 %v896_v32, %v674_v3  ;;  %v710_v7 = vmax.f32 %v672_v0, 0.0 }
 0x201   : > { %v713_v6 = vmax.f32 %v683_v2, 0.0 }
 0x202   : > { %v711_v8 = vmax.f32 %v675_v4, 0.0 }
 0x203   : > { %v968_v9 = vpack.c.bf16 %v713_v6, %v712_v5 }
 0x204   : > { %v963_v10 = vpack.c.bf16 %v711_v8, %v710_v7 }
 0x205   : > { %984 = vst [vmem:[%s1299_s27 + $0x28] sm:$0xff] %v968_v9  }
 0x206   : > { %983 = vst [vmem:[%s1299_s27 + $0x20] sm:$0xff] %v963_v10  }
 0x20c   : > { %v1097_v11 = vpop.f32.mrb[12].mxu1 }
 0x20d   : > { %v696_v12 = vadd.f32 %v1097_v11, %v896_v32  ;;  %v687_v13 = vpop.f32.mrb[13].mxu1 }
 0x20e   : > { %v688_v14 = vadd.f32 %v896_v32, %v687_v13  ;;  %v1098_v15 = vpop.f32.mrb[14].mxu1 }
 0x20f   : > { %v699_v16 = vadd.f32 %v1098_v15, %v896_v32  ;;  %v690_v17 = vpop.f32.mrb[15].mxu1  ;;  %v716_v19 = vmax.f32 %v696_v12, 0.0 }
 0x210   : > { %v691_v18 = vadd.f32 %v896_v32, %v690_v17  ;;  %v714_v21 = vmax.f32 %v688_v14, 0.0 }
 0x211   : > { %v717_v20 = vmax.f32 %v699_v16, 0.0 }
 0x212   : > { %v715_v22 = vmax.f32 %v691_v18, 0.0 }
 0x213   : > { %v978_v23 = vpack.c.bf16 %v717_v20, %v716_v19 }
 0x214   : > { %v973_v24 = vpack.c.bf16 %v715_v22, %v714_v21 }
 0x215   : > { %986 = vst [vmem:[%s1299_s27 + $0x38] sm:$0xff] %v978_v23  }
 0x216   : > { %985 = vst [vmem:[%s1299_s27 + $0x30] sm:$0xff] %v973_v24  }
 0x217 PF: > { %s14_s15 = sadd.s32 1, %s1161_s15  }
 0x218   : > { %p11_p4 = scmp.ge.s32.totalorder %s14_s15, 4  }
 0x21a   :  { %13 = sbr.rel (!%p11_p4) target bundleno = 1 (0x1), region = 66 }

// kernel: gcn_model_vae_forward.5
= control target key start
LH: loop header
LB: loop body
LE: loop exit
PB: predicated region body
PF: predicated region fallthrough
CT: control target
= control target key end

     0   :  { %s1424_s24 = smov 0   ;;  %s1613_s0 = inlined_call_operand.vmem [shape: bf16[256,256], index: 0, kind: input, shape index: {}]   ;;  %s1614_s1 = inlined_call_operand.vmem [shape: bf16[256,128], index: 1, kind: input, shape index: {}]   ;;  %s1615_s2 = inlined_call_operand.vmem [shape: bf16[128,128], index: 2, kind: input, shape index: {}]   ;;  %s1616_s3 = inlined_call_operand.vmem [shape: f32[1,128], index: 3, kind: input, shape index: {}]   ;;  %s1617_s4 = inlined_call_operand.vmem [shape: bf16[128,128], index: 4, kind: input, shape index: {}]   ;;  %s1618_s5 = inlined_call_operand.vmem [shape: f32[1,128], index: 5, kind: input, shape index: {}]   ;;  %s1619_s6 = inlined_call_operand.vmem [shape: f32[256,128], index: 6, kind: output, shape index: {0}]   ;;  %s1620_s7 = inlined_call_operand.vmem [shape: f32[256,128], index: 7, kind: output, shape index: {1}]  }
   0x1 LB: > { %s1087_s25 = sadd.s32 4294967295, %s1382_s24   ;;  %p1091_p0 = scmp.ge.s32.totalorder %s1382_s24, 1  ;;  %s1382_s24 = sphi %s1424_s24, %s18_s24  }
   0x2   : > { %p242_p1 = scmp.lt.s32.totalorder %s1382_s24, 3 }
   0x4   : > { %p243_p2 = pnand %p1091_p0, %p242_p1 }
   0x5   : > { %v1320_v0 = vld [vmem:[%s1614_s1 + $0x40] sm:$0xff] (!%p243_p2)   ;;  %s1092_s28 = sshll.u32 (!%p243_p2), %s1087_s25, 4  ;;  %v1322_v2 = vld [vmem:[%s1614_s1 + $0x48] sm:$0xff] (!%p243_p2)   ;;  %v1324_v4 = vld [vmem:[%s1614_s1 + $0x50] sm:$0xff] (!%p243_p2)  }
   0x6   : > { %246 = sbr.rel (%p243_p2) target bundleno = 563 (0x233), region = 44  ;;  %v1321_v1 = vld [vmem:[%s1614_s1] sm:$0xff] (!%p243_p2)   ;;  %1152 = vmatprep.subr.bf16.mxu0 (!%p243_p2), %v1320_v0  ;;  %v1323_v3 = vld [vmem:[%s1614_s1 + $0x8] sm:$0xff] (!%p243_p2)   ;;  %p281_p3 = scmp.lt.s32.totalorder (!%p243_p2), %s1092_s28, 31  ;;  %v1325_v5 = vld [vmem:[%s1614_s1 + $0x10] sm:$0xff] (!%p243_p2)  }
   0x7   : > { %1153 = vmatpush3.bf16.msra.mxu0 (!%p243_p2), %v1321_v1  ;;  %v1326_v6 = vld [vmem:[%s1614_s1 + $0x58] sm:$0xff] (!%p243_p2)   ;;  %v1328_v8 = vld [vmem:[%s1614_s1 + $0x60] sm:$0xff] (!%p243_p2)   ;;  %v1330_v10 = vld [vmem:[%s1614_s1 + $0x68] sm:$0xff] (!%p243_p2)  }
   0x8   : > { %1154 = vmatprep.subr.bf16.mxu0 (!%p243_p2), %v1322_v2  ;;  %v1327_v7 = vld [vmem:[%s1614_s1 + $0x18] sm:$0xff] (!%p243_p2)   ;;  %v1329_v9 = vld [vmem:[%s1614_s1 + $0x20] sm:$0xff] (!%p243_p2)   ;;  %v1331_v12 = vld [vmem:[%s1614_s1 + $0x28] sm:$0xff] (!%p243_p2)  }
   0x9   : > { %v1332_v13 = vld [vmem:[%s1614_s1 + $0x70] sm:$0xff] (!%p243_p2)   ;;  %v1334_v15 = vld [vmem:[%s1614_s1 + $0x78] sm:$0xff] (!%p243_p2)   ;;  %v1360_v17 = vld [vmem:[%s1615_s2] sm:$0xff] (!%p243_p2)  }
   0xa   : > { %v1333_v14 = vld [vmem:[%s1614_s1 + $0x30] sm:$0xff] (!%p243_p2)   ;;  %v1335_v16 = vld [vmem:[%s1614_s1 + $0x38] sm:$0xff] (!%p243_p2)   ;;  %v1361_v19 = vld [vmem:[%s1615_s2 + $0x8] sm:$0xff] (!%p243_p2)   ;;  %1248 = vmatprep.subr.bf16.mxu1 (!%p243_p2), %v1360_v17 }
   0xb   : > { %1155 = vmatpush3.bf16.msra.mxu0 (!%p243_p2), %v1323_v3  ;;  %1249 = vmatpush3.bf16.msra.mxu1 (!%p243_p2), %v1360_v17  ;;  %v1362_v21 = vld [vmem:[%s1615_s2 + $0x10] sm:$0xff] (!%p243_p2)   ;;  %v1363_v22 = vld [vmem:[%s1615_s2 + $0x18] sm:$0xff] (!%p243_p2)   ;;  %v1364_v36 = vld [vmem:[%s1615_s2 + $0x20] sm:$0xff] (!%p243_p2)  }
   0xc   : > { %1156 = vmatprep.subr.bf16.mxu0 (!%p243_p2), %v1324_v4  ;;  %1250 = vmatprep.subr.bf16.mxu1 (!%p243_p2), %v1361_v19  ;;  %v1365_v37 = vld [vmem:[%s1615_s2 + $0x28] sm:$0xff] (!%p243_p2)   ;;  %v1366_v38 = vld [vmem:[%s1615_s2 + $0x30] sm:$0xff] (!%p243_p2)   ;;  %v1367_v39 = vld [vmem:[%s1615_s2 + $0x38] sm:$0xff] (!%p243_p2)  }
   0xd   : > { %s1622_s28 = smov (!%p281_p3, %s1092_s28), 31  ;;  %v1368_v40 = vld [vmem:[%s1617_s4] sm:$0xff]   ;;  %v1369_v55 = vld [vmem:[%s1617_s4 + $0x8] sm:$0xff]   ;;  %v1370_v60 = vld [vmem:[%s1617_s4 + $0x10] sm:$0xff]  }
   0xe   : > { %s1456_s20 = sshll.u32 %s1622_s28, 3  ;;  %v1371_v0 = vld [vmem:[%s1617_s4 + $0x18] sm:$0xff]  }
   0xf   : > { %1157 = vmatpush3.bf16.msra.mxu0 %v1325_v5  ;;  %s1465_s26 = scalar_lea.vmem %s1613_s0, %s1456_s20  ;;  %1251 = vmatpush3.bf16.msra.mxu1 %v1361_v19  ;;  %v1372_v5 = vld [vmem:[%s1617_s4 + $0x20] sm:$0xff]   ;;  %s1567_s12 = scalar_lea.vmem %s1619_s6, %s1456_s20 }
  0x10   : > { %1158 = vmatprep.subr.bf16.mxu0 %v1326_v6  ;;  %v1338_v11 = vld [vmem:[%s1465_s26 + $0x4] ss:$8 sps:$4 sm:$0xff]   ;;  %v1336_v18 = vld [vmem:[%s1465_s26] ss:$8 sps:$4 sm:$0xff]   ;;  %v1339_v20 = vld [vmem:[%s1465_s26 + $0x14] ss:$8 sps:$4 sm:$0xff]   ;;  %1252 = vmatprep.subr.bf16.mxu1 %v1362_v21  ;;  %s1592_s17 = scalar_lea.vmem %s1620_s7, %s1456_s20 }
  0x11   : > { %556 = vmatprep.mubr.bf16.mxu0 %v1338_v11  ;;  %v1341_v23 = vld [vmem:[%s1465_s26 + $0x10] ss:$8 sps:$4 sm:$0xff]   ;;  %v1342_v24 = vld [vmem:[%s1465_s26 + $0x24] ss:$8 sps:$4 sm:$0xff]   ;;  %v1344_v25 = vld [vmem:[%s1465_s26 + $0x20] ss:$8 sps:$4 sm:$0xff]  }
  0x12   : > { %v1345_v26 = vld [vmem:[%s1465_s26 + $0x34] ss:$8 sps:$4 sm:$0xff]   ;;  %v1347_v27 = vld [vmem:[%s1465_s26 + $0x30] ss:$8 sps:$4 sm:$0xff]   ;;  %v1348_v28 = vld [vmem:[%s1465_s26 + $0x44] ss:$8 sps:$4 sm:$0xff]  }
  0x13   : > { %1159 = vmatpush3.bf16.msra.mxu0 %v1327_v7  ;;  %1253 = vmatpush3.bf16.msra.mxu1 %v1362_v21  ;;  %v1350_v29 = vld [vmem:[%s1465_s26 + $0x40] ss:$8 sps:$4 sm:$0xff]   ;;  %v1351_v30 = vld [vmem:[%s1465_s26 + $0x54] ss:$8 sps:$4 sm:$0xff]   ;;  %v1353_v31 = vld [vmem:[%s1465_s26 + $0x50] ss:$8 sps:$4 sm:$0xff]  }
  0x14   : > { %1160 = vmatprep.subr.bf16.mxu0 %v1328_v8  ;;  %1254 = vmatprep.subr.bf16.mxu1 %v1363_v22  ;;  %v1354_v32 = vld [vmem:[%s1465_s26 + $0x64] ss:$8 sps:$4 sm:$0xff]   ;;  %v1356_v33 = vld [vmem:[%s1465_s26 + $0x60] ss:$8 sps:$4 sm:$0xff]   ;;  %v1357_v34 = vld [vmem:[%s1465_s26 + $0x74] ss:$8 sps:$4 sm:$0xff]  }
  0x15   : > { %v1359_v35 = vld [vmem:[%s1465_s26 + $0x70] ss:$8 sps:$4 sm:$0xff]  }
  0x17   : > { %1161 = vmatpush3.bf16.msra.mxu0 %v1329_v9  ;;  %1255 = vmatpush3.bf16.msra.mxu1 %v1363_v22  ;;  %v1373_v9 = vld [vmem:[%s1617_s4 + $0x28] sm:$0xff]  }
  0x18   : > { %1162 = vmatprep.subr.bf16.mxu0 %v1330_v10  ;;  %1256 = vmatprep.subr.bf16.mxu1 %v1364_v36 }
  0x1b   : > { %1163 = vmatpush3.bf16.msra.mxu0 %v1331_v12  ;;  %1257 = vmatpush3.bf16.msra.mxu1 %v1364_v36 }
  0x1c   : > { %1164 = vmatprep.subr.bf16.mxu0 %v1332_v13  ;;  %1258 = vmatprep.subr.bf16.mxu1 %v1365_v37 }
  0x1f   : > { %1165 = vmatpush3.bf16.msra.mxu0 %v1333_v14  ;;  %1259 = vmatpush3.bf16.msra.mxu1 %v1365_v37  ;;  %v1374_v14 = vld [vmem:[%s1617_s4 + $0x30] sm:$0xff]  }
  0x20   : > { %1166 = vmatprep.subr.bf16.mxu0 %v1334_v15  ;;  %1260 = vmatprep.subr.bf16.mxu1 %v1366_v38 }
  0x23   : > { %1167 = vmatpush3.bf16.msra.mxu0 %v1335_v16  ;;  %1261 = vmatpush3.bf16.msra.mxu1 %v1366_v38 }
  0x24   : > { %1262 = vmatprep.subr.bf16.mxu1 %v1367_v39 }
  0x26   : > { %557 = vmatmul.mubr.bf16.vlgmr.msra.gmra.mrb[0].mxu0 %v1336_v18  ;;  %v1375_v18 = vld [vmem:[%s1617_s4 + $0x38] sm:$0xff]  }
  0x27   : > { %564 = vmatprep.mubr.bf16.mxu0 %v1339_v20  ;;  %1263 = vmatpush3.bf16.msra.mxu1 %v1367_v39 }
  0x28   : > { %1280 = vmatprep.subr.bf16.mxu1 %v1368_v40 }
  0x2e   : > { %565 = vmatmul.mubr.bf16.gmra.mrb[4].mxu0 %v1341_v23 }
  0x2f   : > { %572 = vmatprep.mubr.bf16.mxu0 %v1342_v24 }
  0x36   : > { %573 = vmatmul.mubr.bf16.gmra.mrb[8].mxu0 %v1344_v25 }
  0x37   : > { %580 = vmatprep.mubr.bf16.mxu0 %v1345_v26 }
  0x3e   : > { %581 = vmatmul.mubr.bf16.gmra.mrb[12].mxu0 %v1347_v27 }
  0x3f   : > { %588 = vmatprep.mubr.bf16.mxu0 %v1348_v28 }
  0x46   : > { %589 = vmatmul.mubr.bf16.gmra.mrb[16].mxu0 %v1350_v29 }
  0x47   : > { %596 = vmatprep.mubr.bf16.mxu0 %v1351_v30 }
  0x4e   : > { %597 = vmatmul.mubr.bf16.gmra.mrb[20].mxu0 %v1353_v31 }
  0x4f   : > { %604 = vmatprep.mubr.bf16.mxu0 %v1354_v32 }
  0x56   : > { %605 = vmatmul.mubr.bf16.gmra.mrb[24].mxu0 %v1356_v33 }
  0x57   : > { %612 = vmatprep.mubr.bf16.mxu0 %v1357_v34 }
  0x5e   : > { %613 = vmatmul.mubr.bf16.gmra.mrb[28].mxu0 %v1359_v35 }
  0xf9   : > { %v1168_v41 = vpop.f32.mrb[0].mxu0 }
  0xfa   : > { %v1169_v42 = vpop.f32.mrb[1].mxu0 }
  0xfb   : > { %v1170_v43 = vadd.f32 %v1169_v42, %v1168_v41  ;;  %v1171_v44 = vpop.f32.mrb[2].mxu0 }
  0xfc   : > { %v1172_v45 = vpop.f32.mrb[3].mxu0 }
  0xfd   : > { %v1173_v46 = vadd.f32 %v1172_v45, %v1171_v44 }
  0xff   : > { %v1531_v47 = vpack.c.bf16 %v1173_v46, %v1170_v43 }
 0x101   : > { %v1174_v48 = vpop.f32.mrb[4].mxu0  ;;  %1264 = vmatprep.mubr.bf16.mxu1 %v1531_v47 }
 0x102   : > { %v1175_v49 = vpop.f32.mrb[5].mxu0 }
 0x103   : > { %v1176_v50 = vadd.f32 %v1175_v49, %v1174_v48  ;;  %v1177_v51 = vpop.f32.mrb[6].mxu0 }
 0x104   : > { %v1178_v52 = vpop.f32.mrb[7].mxu0 }
 0x105   : > { %v1179_v53 = vadd.f32 %v1178_v52, %v1177_v51 }
 0x107   : > { %v1534_v54 = vpack.c.bf16 %v1179_v53, %v1176_v50 }
 0x109   : > { %v1180_v56 = vpop.f32.mrb[8].mxu0  ;;  %1265 = vmatmul.mubr.bf16.vlgmr.msra.gmra.mrb[0].mxu1 %v1534_v54 }
 0x10a   : > { %v1181_v57 = vpop.f32.mrb[9].mxu0  ;;  %1281 = vmatpush3.bf16.msra.mxu1 %v1368_v40  ;;  %v1131_v40 = vld [vmem:[%s1616_s3] ss:$0 sm:$0xff] }
 0x10b   : > { %v1182_v58 = vadd.f32 %v1181_v57, %v1180_v56  ;;  %v1183_v59 = vpop.f32.mrb[10].mxu0  ;;  %1282 = vmatprep.subr.bf16.mxu1 %v1369_v55 }
 0x10c   : > { %v1184_v61 = vpop.f32.mrb[11].mxu0 }
 0x10d   : > { %v1185_v62 = vadd.f32 %v1184_v61, %v1183_v59 }
 0x10e   : > { %1283 = vmatpush3.bf16.msra.mxu1 %v1369_v55 }
 0x10f   : > { %v623_v63 = vpack.c.bf16 %v1185_v62, %v1182_v58  ;;  %1284 = vmatprep.subr.bf16.mxu1 %v1370_v60 }
 0x111   : > { %v1186_v1 = vpop.f32.mrb[12].mxu0  ;;  %1268 = vmatprep.mubr.bf16.mxu1 %v623_v63 }
 0x112   : > { %v1187_v2 = vpop.f32.mrb[13].mxu0  ;;  %1285 = vmatpush3.bf16.msra.mxu1 %v1370_v60 }
 0x113   : > { %v1188_v3 = vadd.f32 %v1187_v2, %v1186_v1  ;;  %v1189_v4 = vpop.f32.mrb[14].mxu0  ;;  %1286 = vmatprep.subr.bf16.mxu1 %v1371_v0 }
 0x114   : > { %v1190_v6 = vpop.f32.mrb[15].mxu0 }
 0x115   : > { %v1191_v7 = vadd.f32 %v1190_v6, %v1189_v4 }
 0x116   : > { %1287 = vmatpush3.bf16.msra.mxu1 %v1371_v0 }
 0x117   : > { %v624_v8 = vpack.c.bf16 %v1191_v7, %v1188_v3  ;;  %1288 = vmatprep.subr.bf16.mxu1 %v1372_v5 }
 0x119   : > { %v1192_v10 = vpop.f32.mrb[16].mxu0  ;;  %1269 = vmatmul.mubr.bf16.gmra.mrb[4].mxu1 %v624_v8 }
 0x11a   : > { %v1193_v11 = vpop.f32.mrb[17].mxu0  ;;  %1289 = vmatpush3.bf16.msra.mxu1 %v1372_v5 }
 0x11b   : > { %v1194_v12 = vadd.f32 %v1193_v11, %v1192_v10  ;;  %v1195_v13 = vpop.f32.mrb[18].mxu0  ;;  %1290 = vmatprep.subr.bf16.mxu1 %v1373_v9 }
 0x11c   : > { %v1196_v15 = vpop.f32.mrb[19].mxu0 }
 0x11d   : > { %v1197_v16 = vadd.f32 %v1196_v15, %v1195_v13 }
 0x11e   : > { %1291 = vmatpush3.bf16.msra.mxu1 %v1373_v9  ;;  %v1140_v9 = vld [vmem:[%s1618_s5] ss:$0 sm:$0xff] }
 0x11f   : > { %v625_v17 = vpack.c.bf16 %v1197_v16, %v1194_v12  ;;  %1292 = vmatprep.subr.bf16.mxu1 %v1374_v14 }
 0x121   : > { %v1198_v19 = vpop.f32.mrb[20].mxu0  ;;  %1272 = vmatprep.mubr.bf16.mxu1 %v625_v17 }
 0x122   : > { %v1199_v20 = vpop.f32.mrb[21].mxu0  ;;  %1293 = vmatpush3.bf16.msra.mxu1 %v1374_v14 }
 0x123   : > { %v1200_v21 = vadd.f32 %v1199_v20, %v1198_v19  ;;  %v1201_v22 = vpop.f32.mrb[22].mxu0  ;;  %1294 = vmatprep.subr.bf16.mxu1 %v1375_v18 }
 0x124   : > { %v1202_v23 = vpop.f32.mrb[23].mxu0 }
 0x125   : > { %v1203_v24 = vadd.f32 %v1202_v23, %v1201_v22 }
 0x126   : > { %1295 = vmatpush3.bf16.msra.mxu1 %v1375_v18 }
 0x127   : > { %v626_v25 = vpack.c.bf16 %v1203_v24, %v1200_v21 }
 0x129   : > { %v1204_v26 = vpop.f32.mrb[24].mxu0  ;;  %1273 = vmatmul.mubr.bf16.gmra.mrb[8].mxu1 %v626_v25 }
 0x12a   : > { %v1205_v27 = vpop.f32.mrb[25].mxu0 }
 0x12b   : > { %v1206_v28 = vadd.f32 %v1205_v27, %v1204_v26  ;;  %v1207_v29 = vpop.f32.mrb[26].mxu0 }
 0x12c   : > { %v1208_v30 = vpop.f32.mrb[27].mxu0 }
 0x12d   : > { %v1209_v31 = vadd.f32 %v1208_v30, %v1207_v29 }
 0x12f   : > { %v627_v32 = vpack.c.bf16 %v1209_v31, %v1206_v28 }
 0x131   : > { %v1210_v33 = vpop.f32.mrb[28].mxu0  ;;  %1276 = vmatprep.mubr.bf16.mxu1 %v627_v32 }
 0x132   : > { %v1211_v34 = vpop.f32.mrb[29].mxu0 }
 0x133   : > { %v1212_v35 = vadd.f32 %v1211_v34, %v1210_v33  ;;  %v1213_v36 = vpop.f32.mrb[30].mxu0 }
 0x134   : > { %v1214_v37 = vpop.f32.mrb[31].mxu0 }
 0x135   : > { %v1215_v38 = vadd.f32 %v1214_v37, %v1213_v36 }
 0x137   : > { %v628_v39 = vpack.c.bf16 %v1215_v38, %v1212_v35 }
 0x139   : > { %1277 = vmatmul.mubr.bf16.gmra.mrb[12].mxu1 %v628_v39 }
 0x13a   : > { %1296 = vmatprep.mubr.bf16.mxu1 %v1531_v47 }
 0x141   : > { %1297 = vmatmul.mubr.bf16.vlgmr.msra.gmra.mrb[16].mxu1 %v1534_v54 }
 0x142   : > { %1300 = vmatprep.mubr.bf16.mxu1 %v623_v63 }
 0x149   : > { %1301 = vmatmul.mubr.bf16.gmra.mrb[20].mxu1 %v624_v8 }
 0x14a   : > { %1304 = vmatprep.mubr.bf16.mxu1 %v625_v17 }
 0x151   : > { %1305 = vmatmul.mubr.bf16.gmra.mrb[24].mxu1 %v626_v25 }
 0x152   : > { %1308 = vmatprep.mubr.bf16.mxu1 %v627_v32 }
 0x159   : > { %1309 = vmatmul.mubr.bf16.gmra.mrb[28].mxu1 %v628_v39 }
 0x1dc   : > { %v1266_v41 = vpop.f32.mrb[0].mxu1 }
 0x1dd   : > { %v759_v42 = vadd.f32 %v1266_v41, %v1131_v40  ;;  %v750_v43 = vpop.f32.mrb[1].mxu1 }
 0x1de   : > { %v751_v44 = vadd.f32 %v1131_v40, %v750_v43  ;;  %v1267_v45 = vpop.f32.mrb[2].mxu1 }
 0x1df   : > { %815 = vst [vmem:[%s1567_s12 + $0x10] sm:$0xff] %v759_v42  ;;  %v762_v46 = vadd.f32 %v1267_v45, %v1131_v40  ;;  %v753_v47 = vpop.f32.mrb[3].mxu1 }
 0x1e0   : > { %813 = vst [vmem:[%s1567_s12] sm:$0xff] %v751_v44  ;;  %v754_v48 = vadd.f32 %v1131_v40, %v753_v47 }
 0x1e1   : > { %816 = vst [vmem:[%s1567_s12 + $0x18] sm:$0xff] %v762_v46 }
 0x1e2   : > { %814 = vst [vmem:[%s1567_s12 + $0x8] sm:$0xff] %v754_v48 }
 0x1ec   : > { %v1270_v49 = vpop.f32.mrb[4].mxu1 }
 0x1ed   : > { %v775_v50 = vadd.f32 %v1270_v49, %v1131_v40  ;;  %v766_v51 = vpop.f32.mrb[5].mxu1 }
 0x1ee   : > { %v767_v52 = vadd.f32 %v1131_v40, %v766_v51  ;;  %v1271_v53 = vpop.f32.mrb[6].mxu1 }
 0x1ef   : > { %819 = vst [vmem:[%s1567_s12 + $0x30] sm:$0xff] %v775_v50  ;;  %v778_v54 = vadd.f32 %v1271_v53, %v1131_v40  ;;  %v769_v55 = vpop.f32.mrb[7].mxu1 }
 0x1f0   : > { %817 = vst [vmem:[%s1567_s12 + $0x20] sm:$0xff] %v767_v52  ;;  %v770_v56 = vadd.f32 %v1131_v40, %v769_v55 }
 0x1f1   : > { %820 = vst [vmem:[%s1567_s12 + $0x38] sm:$0xff] %v778_v54 }
 0x1f2   : > { %818 = vst [vmem:[%s1567_s12 + $0x28] sm:$0xff] %v770_v56 }
 0x1fc   : > { %v1274_v57 = vpop.f32.mrb[8].mxu1 }
 0x1fd   : > { %v791_v58 = vadd.f32 %v1274_v57, %v1131_v40  ;;  %v782_v59 = vpop.f32.mrb[9].mxu1 }
 0x1fe   : > { %v783_v60 = vadd.f32 %v1131_v40, %v782_v59  ;;  %v1275_v61 = vpop.f32.mrb[10].mxu1 }
 0x1ff   : > { %823 = vst [vmem:[%s1567_s12 + $0x50] sm:$0xff] %v791_v58  ;;  %v794_v62 = vadd.f32 %v1275_v61, %v1131_v40  ;;  %v785_v63 = vpop.f32.mrb[11].mxu1 }
 0x200   : > { %821 = vst [vmem:[%s1567_s12 + $0x40] sm:$0xff] %v783_v60  ;;  %v786_v0 = vadd.f32 %v1131_v40, %v785_v63 }
 0x201   : > { %824 = vst [vmem:[%s1567_s12 + $0x58] sm:$0xff] %v794_v62 }
 0x202   : > { %822 = vst [vmem:[%s1567_s12 + $0x48] sm:$0xff] %v786_v0 }
 0x20c   : > { %v1278_v1 = vpop.f32.mrb[12].mxu1 }
 0x20d   : > { %v807_v2 = vadd.f32 %v1278_v1, %v1131_v40  ;;  %v798_v3 = vpop.f32.mrb[13].mxu1 }
 0x20e   : > { %v799_v4 = vadd.f32 %v1131_v40, %v798_v3  ;;  %v1279_v5 = vpop.f32.mrb[14].mxu1 }
 0x20f   : > { %827 = vst [vmem:[%s1567_s12 + $0x70] sm:$0xff] %v807_v2  ;;  %v810_v6 = vadd.f32 %v1279_v5, %v1131_v40  ;;  %v801_v7 = vpop.f32.mrb[15].mxu1 }
 0x210   : > { %825 = vst [vmem:[%s1567_s12 + $0x60] sm:$0xff] %v799_v4  ;;  %v802_v8 = vadd.f32 %v1131_v40, %v801_v7 }
 0x211   : > { %828 = vst [vmem:[%s1567_s12 + $0x78] sm:$0xff] %v810_v6 }
 0x212   : > { %826 = vst [vmem:[%s1567_s12 + $0x68] sm:$0xff] %v802_v8 }
 0x214   : > { %v1298_v10 = vpop.f32.mrb[16].mxu1 }
 0x215   : > { %v927_v11 = vadd.f32 %v1298_v10, %v1140_v9  ;;  %v918_v12 = vpop.f32.mrb[17].mxu1 }
 0x216   : > { %v919_v13 = vadd.f32 %v1140_v9, %v918_v12  ;;  %v1299_v14 = vpop.f32.mrb[18].mxu1 }
 0x217   : > { %983 = vst [vmem:[%s1592_s17 + $0x10] sm:$0xff] %v927_v11  ;;  %v930_v15 = vadd.f32 %v1299_v14, %v1140_v9  ;;  %v921_v16 = vpop.f32.mrb[19].mxu1 }
 0x218   : > { %981 = vst [vmem:[%s1592_s17] sm:$0xff] %v919_v13  ;;  %v922_v17 = vadd.f32 %v1140_v9, %v921_v16 }
 0x219   : > { %984 = vst [vmem:[%s1592_s17 + $0x18] sm:$0xff] %v930_v15 }
 0x21a   : > { %982 = vst [vmem:[%s1592_s17 + $0x8] sm:$0xff] %v922_v17 }
 0x21c   : > { %v1302_v18 = vpop.f32.mrb[20].mxu1 }
 0x21d   : > { %v943_v19 = vadd.f32 %v1302_v18, %v1140_v9  ;;  %v934_v20 = vpop.f32.mrb[21].mxu1 }
 0x21e   : > { %v935_v21 = vadd.f32 %v1140_v9, %v934_v20  ;;  %v1303_v22 = vpop.f32.mrb[22].mxu1 }
 0x21f   : > { %987 = vst [vmem:[%s1592_s17 + $0x30] sm:$0xff] %v943_v19  ;;  %v946_v23 = vadd.f32 %v1303_v22, %v1140_v9  ;;  %v937_v24 = vpop.f32.mrb[23].mxu1 }
 0x220   : > { %985 = vst [vmem:[%s1592_s17 + $0x20] sm:$0xff] %v935_v21  ;;  %v938_v25 = vadd.f32 %v1140_v9, %v937_v24 }
 0x221   : > { %988 = vst [vmem:[%s1592_s17 + $0x38] sm:$0xff] %v946_v23 }
 0x222   : > { %986 = vst [vmem:[%s1592_s17 + $0x28] sm:$0xff] %v938_v25 }
 0x224   : > { %v1306_v26 = vpop.f32.mrb[24].mxu1 }
 0x225   : > { %v959_v27 = vadd.f32 %v1306_v26, %v1140_v9  ;;  %v950_v28 = vpop.f32.mrb[25].mxu1 }
 0x226   : > { %v951_v29 = vadd.f32 %v1140_v9, %v950_v28  ;;  %v1307_v30 = vpop.f32.mrb[26].mxu1 }
 0x227   : > { %991 = vst [vmem:[%s1592_s17 + $0x50] sm:$0xff] %v959_v27  ;;  %v962_v31 = vadd.f32 %v1307_v30, %v1140_v9  ;;  %v953_v32 = vpop.f32.mrb[27].mxu1 }
 0x228   : > { %989 = vst [vmem:[%s1592_s17 + $0x40] sm:$0xff] %v951_v29  ;;  %v954_v33 = vadd.f32 %v1140_v9, %v953_v32 }
 0x229   : > { %992 = vst [vmem:[%s1592_s17 + $0x58] sm:$0xff] %v962_v31 }
 0x22a   : > { %990 = vst [vmem:[%s1592_s17 + $0x48] sm:$0xff] %v954_v33 }
 0x22c   : > { %v1310_v34 = vpop.f32.mrb[28].mxu1 }
 0x22d   : > { %v975_v35 = vadd.f32 %v1310_v34, %v1140_v9  ;;  %v966_v36 = vpop.f32.mrb[29].mxu1 }
 0x22e   : > { %v967_v37 = vadd.f32 %v1140_v9, %v966_v36  ;;  %v1311_v38 = vpop.f32.mrb[30].mxu1 }
 0x22f   : > { %995 = vst [vmem:[%s1592_s17 + $0x70] sm:$0xff] %v975_v35  ;;  %v978_v39 = vadd.f32 %v1311_v38, %v1140_v9  ;;  %v969_v40 = vpop.f32.mrb[31].mxu1 }
 0x230   : > { %993 = vst [vmem:[%s1592_s17 + $0x60] sm:$0xff] %v967_v37  ;;  %v970_v41 = vadd.f32 %v1140_v9, %v969_v40 }
 0x231   : > { %996 = vst [vmem:[%s1592_s17 + $0x78] sm:$0xff] %v978_v39 }
 0x232   : > { %994 = vst [vmem:[%s1592_s17 + $0x68] sm:$0xff] %v970_v41 }
 0x233 PF: > { %s18_s24 = sadd.s32 1, %s1382_s24  }
 0x234   : > { %p15_p4 = scmp.ge.s32.totalorder %s18_s24, 4  }
 0x236   :  { %17 = sbr.rel (!%p15_p4) target bundleno = 1 (0x1), region = 86 }

</bundles_post_ra>
